<compile_context>
chip_gen: v5e
topology: v5e:2x2
jax: 0.10.0
libtpu: 0.0.40
codegen_flags: <defaults>
</compile_context>

<pallas_src>
import math

import jax
import jax.numpy as jnp
import numpy as np
from jax import lax
from jax.experimental import pallas as pl
from jax.experimental.pallas import tpu as pltpu

LANE = 128


def _round_up(x, m):
    return ((x + m - 1) // m) * m


def _prelu(h, a):
    return jnp.where(h >= 0, h, a * h)


def _lin(h, w_ref, b_ref):
    # bf16 x bf16 on the MXU, f32 accumulation, f32 bias add.
    return (jnp.dot(h.astype(jnp.bfloat16), w_ref[...],
                    preferred_element_type=jnp.float32) + b_ref[...])


# ---------------------------------------------------------------------------
# Run-once kernel: TimeToArrival embedding + tta_enc MLP  ->  pe (T, 512)
# ---------------------------------------------------------------------------
def tta_pe_kernel(arg_ref, wt1, bt1, wt2, bt2, wt3, bt3, slopes_ref, pe_ref):
    a = slopes_ref[2]                                    # tta_enc PReLU slope
    arg = arg_ref[...]                                   # (T, d_tta)
    col = lax.broadcasted_iota(jnp.int32, arg.shape, 1)
    emb = jnp.where(col % 2 == 0, jnp.sin(arg), jnp.cos(arg))
    h = _prelu(_lin(emb, wt1, bt1), a)
    h = _prelu(_lin(h, wt2, bt2), a)
    pe_ref[...] = _lin(h, wt3, bt3)                      # (T, 512), no act at last


# ---------------------------------------------------------------------------
# Main kernel: one grid step = TM = nb*T flattened (batch*time) rows.
# pe_ref is the grid-invariant (TM, 512) positional slab, resident in VMEM.
# ---------------------------------------------------------------------------
def gating_kernel(x_ref, pe_ref,
                  we1, be1, we2, be2,
                  wg1, bg1, wg2, bg2, wg3, bg3,
                  slopes_ref, out_ref):
    a_enc = slopes_ref[0]
    a_lay = slopes_ref[1]

    # enc MLP (activation at last) + positional add
    h = _prelu(_lin(x_ref[...], we1, be1), a_enc)        # (TM, 512)
    h = _prelu(_lin(h, we2, be2), a_enc)
    h = h + pe_ref[...]                                  # resident f32, no HBM stream

    # gating head
    h = _prelu(_lin(h, wg1, bg1), a_lay)
    h = _prelu(_lin(h, wg2, bg2), a_lay)
    logits = _lin(h, wg3, bg3)                           # (TM, E_pad), pad cols ~ -1e30

    # softmax over experts (padded columns contribute exp() == 0)
    m = jnp.max(logits, axis=-1, keepdims=True)
    e = jnp.exp(logits - m)
    s = jnp.sum(e, axis=-1, keepdims=True)
    r = pl.reciprocal(s, approx=True)                    # EUP seed
    r = r * (2.0 - s * r)                                # Newton step -> f32 accurate
    out_ref[...] = e * r


# ---------------------------------------------------------------------------
# Tiling choice
# ---------------------------------------------------------------------------
def _choose_batches_per_tile(B, T):
    """Batches per row tile (nb).  TM = nb*T must be a multiple of 8 (sublane).

    Targets ~1024 rows per tile for large inputs, while keeping at least two
    tiles (so the single 'parallel' grid axis can be split across v7x's 2
    TensorCores) and <=10% zero-row padding waste.  Small inputs use one tile.
    """
    unit = 8 // math.gcd(T, 8)          # smallest nb with (nb*T) % 8 == 0
    whole = _round_up(B, unit)          # one tile covering everything
    rows = B * T
    if rows <= 1024:
        return whole
    nb = (1024 // T) // unit * unit if T <= 1024 else 0
    nb = max(unit, min(nb, whole))
    while nb > unit:
        n_tiles = -(-B // nb)           # cdiv
        waste = (n_tiles * nb - B) / float(n_tiles * nb)
        if n_tiles >= 2 and waste <= 0.10:
            break
        nb -= unit
    # TODO(synk): for very long sequences (nb*T row tiles whose activations no
    # longer fit VMEM) a pe-streaming, T-tiled variant would be needed.
    return nb


# ---------------------------------------------------------------------------
# Wrappers
# ---------------------------------------------------------------------------
def _compute_pe(arg_tta, params, slopes):
    """Batch-invariant positional path, run once."""
    T, d_tta = arg_tta.shape
    hidden = params["wt1"].shape[1]
    bf16 = lambda w: w.astype(jnp.bfloat16)
    ws = [bf16(params["wt1"]), params["bt1"],
          bf16(params["wt2"]), params["bt2"],
          bf16(params["wt3"]), params["bt3"]]
    in_specs = ([pl.BlockSpec((T, d_tta), lambda i: (0, 0))]
                + [pl.BlockSpec(w.shape, lambda i: (0, 0)) for w in ws]
                + [pl.BlockSpec(memory_space=pltpu.MemorySpace.SMEM)])
    return pl.pallas_call(
        tta_pe_kernel,
        out_shape=jax.ShapeDtypeStruct((T, hidden), jnp.float32),
        grid_spec=pltpu.PrefetchScalarGridSpec(
            num_scalar_prefetch=0,
            grid=(1,),
            in_specs=in_specs,
            out_specs=pl.BlockSpec((T, hidden), lambda i: (0, 0)),
        ),
        compiler_params=pltpu.CompilerParams(
            dimension_semantics=("arbitrary",)),
    )(arg_tta, *ws, slopes)


def gating_network(x, params):
    """x: (B, T, dof) f32  ->  (B, T, num_experts) softmax weights (f32)."""
    B, T, dof = x.shape
    hidden = params["we1"].shape[1]
    E = params["wg3"].shape[1]
    e_pad = _round_up(max(E, LANE), LANE)
    bf16 = lambda w: w.astype(jnp.bfloat16)

    slopes = params["prelu"].astype(jnp.float32)         # [enc, layers, tta_enc]

    # TimeToArrival argument (div_term is a learnable parameter).
    tta = jnp.arange(T - 1, -1, -1, dtype=jnp.float32)
    arg_tta = tta[:, None] * jnp.repeat(params["div_term"], 2)[None, :]

    # (1) positional encoding, computed once (not per grid step).
    pe = _compute_pe(arg_tta, params, slopes)            # (T, 512) f32

    # (2) batch-aligned row tiling: TM = nb*T rows per grid step.
    nb = _choose_batches_per_tile(B, T)
    tm = nb * T
    b_pad = _round_up(B, nb)
    n_tiles = b_pad // nb
    rows, rows_pad = B * T, b_pad * T

    x_flat = x.reshape(rows, dof)
    if rows_pad != rows:
        x_flat = jnp.pad(x_flat, ((0, rows_pad - rows), (0, 0)))

    # pe broadcast only over the nb batches of ONE tile -> (TM, 512) f32 slab
    # with a constant block index: DMA'd into VMEM exactly once, never
    # re-streamed, and no (B*T)-row tile/pad happens in XLA.
    pe_tile = jnp.tile(pe, (nb, 1))                      # (tm, hidden) f32

    # (3) lane-dense output head: pad E up to 128 columns; padded columns get a
    #     very negative bias so their softmax contribution is exactly 0.
    wg3_p = jnp.pad(bf16(params["wg3"]), ((0, 0), (0, e_pad - E)))
    bg3_p = jnp.pad(params["bg3"], ((0, 0), (0, e_pad - E)), constant_values=-1e30)

    weights = [bf16(params["we1"]), params["be1"],
               bf16(params["we2"]), params["be2"],
               bf16(params["wg1"]), params["bg1"],
               bf16(params["wg2"]), params["bg2"],
               wg3_p, bg3_p]

    in_specs = (
        [pl.BlockSpec((tm, dof), lambda i: (i, 0)),        # x row tile (streamed)
         pl.BlockSpec((tm, hidden), lambda i: (0, 0))]     # pe slab (resident)
        + [pl.BlockSpec(w.shape, lambda i: (0, 0))         # resident bf16 weights
           for w in weights]
        + [pl.BlockSpec(memory_space=pltpu.MemorySpace.SMEM)])  # PReLU slopes

    out = pl.pallas_call(
        gating_kernel,
        out_shape=jax.ShapeDtypeStruct((rows_pad, e_pad), jnp.float32),
        grid_spec=pltpu.PrefetchScalarGridSpec(
            num_scalar_prefetch=0,
            grid=(n_tiles,),
            in_specs=in_specs,
            out_specs=pl.BlockSpec((tm, e_pad), lambda i: (i, 0)),
        ),
        compiler_params=pltpu.CompilerParams(
            dimension_semantics=("parallel",),       # row tiles split across TCs
            vmem_limit_bytes=48 << 20,               # fits v7x's 64 MiB VMEM
        ),
    )(x_flat, pe_tile, *weights, slopes)

    return out[:rows, :E].reshape(B, T, E)


# ---------------------------------------------------------------------------
# Pure-JAX reference (same bf16 weight storage / f32 accumulation as the kernel
# so a tight tolerance is meaningful; the true PyTorch module is all-f32).
# ---------------------------------------------------------------------------
def reference_forward(x, p):
    a_enc, a_lay, a_tta = p["prelu"][0], p["prelu"][1], p["prelu"][2]

    def lin(h, w, b):
        return jnp.dot(h.astype(jnp.bfloat16), w.astype(jnp.bfloat16),
                       preferred_element_type=jnp.float32) + b

    T = x.shape[1]
    tta = jnp.arange(T - 1, -1, -1, dtype=jnp.float32)
    arg = tta[:, None] * jnp.repeat(p["div_term"], 2)[None, :]
    col_even = (jnp.arange(arg.shape[1]) % 2) == 0
    emb = jnp.where(col_even[None, :], jnp.sin(arg), jnp.cos(arg))

    h = _prelu(lin(emb, p["wt1"], p["bt1"]), a_tta)
    h = _prelu(lin(h, p["wt2"], p["bt2"]), a_tta)
    pe = lin(h, p["wt3"], p["bt3"])                      # (T, 512)

    h = _prelu(lin(x, p["we1"], p["be1"]), a_enc)
    h = _prelu(lin(h, p["we2"], p["be2"]), a_enc)
    h = h + pe[None]

    h = _prelu(lin(h, p["wg1"], p["bg1"]), a_lay)
    h = _prelu(lin(h, p["wg2"], p["bg2"]), a_lay)
    logits = lin(h, p["wg3"], p["bg3"])
    return jax.nn.softmax(logits, axis=-1)


def init_params(key, dof, d_tta, num_experts, hidden=512):
    """nn.Linear-style init + TimeToArrival.div_term + PReLU slopes."""
    def linear(k, fan_in, fan_out):
        kw, kb = jax.random.split(k)
        bound = 1.0 / float(np.sqrt(fan_in))
        w = jax.random.uniform(kw, (fan_in, fan_out), jnp.float32, -bound, bound)
        b = jax.random.uniform(kb, (1, fan_out), jnp.float32, -bound, bound)
        return w, b

    keys = jax.random.split(key, 8)
    p = {}
    p["we1"], p["be1"] = linear(keys[0], dof, hidden)
    p["we2"], p["be2"] = linear(keys[1], hidden, hidden)
    p["wt1"], p["bt1"] = linear(keys[2], d_tta, hidden)
    p["wt2"], p["bt2"] = linear(keys[3], hidden, hidden)
    p["wt3"], p["bt3"] = linear(keys[4], hidden, hidden)
    p["wg1"], p["bg1"] = linear(keys[5], hidden, hidden)
    p["wg2"], p["bg2"] = linear(keys[6], hidden, hidden)
    p["wg3"], p["bg3"] = linear(keys[7], hidden, num_experts)
    # TimeToArrival.div_term (learnable nn.Parameter)
    p["div_term"] = 1.0 / jnp.power(
        10000.0, jnp.arange(0, d_tta, 2, dtype=jnp.float32) / d_tta)
    # One shared PReLU slope per MLP: [enc, layers, tta_enc].  nn.PReLU() inits
    # at 0.25; distinct values here exercise the (learnable) slope plumbing.
    p["prelu"] = jnp.array([0.25, 0.15, 0.30], dtype=jnp.float32)
    return p


if __name__ == "__main__":
    B, T, dof = 2, 8, 8
    d_tta, num_experts = 32, 8

    key = jax.random.PRNGKey(0)
    kx, kp = jax.random.split(key)
    x = jax.random.normal(kx, (B, T, dof), jnp.float32)
    params = init_params(kp, dof, d_tta, num_experts)

    out = jax.block_until_ready(gating_network(x, params))
    ref = jax.block_until_ready(reference_forward(x, params))

    assert out.shape == (B, T, num_experts)
    assert np.allclose(np.asarray(jnp.sum(out, axis=-1)), 1.0, atol=1e-4)
    max_err = float(np.max(np.abs(np.asarray(out) - np.asarray(ref))))
    assert np.allclose(np.asarray(out), np.asarray(ref), atol=5e-5), max_err

    print("KERNEL_OK")
</pallas_src>

<mosaic_0001>
module attributes {stable_mosaic.version = 11 : i64} {
  func.func @tta_pe_kernel(%arg0: i32, %arg1: memref<8x32xf32, #tpu.memory_space<vmem>>, %arg2: memref<32x512xbf16, #tpu.memory_space<vmem>>, %arg3: memref<1x512xf32, #tpu.memory_space<vmem>>, %arg4: memref<512x512xbf16, #tpu.memory_space<vmem>>, %arg5: memref<1x512xf32, #tpu.memory_space<vmem>>, %arg6: memref<512x512xbf16, #tpu.memory_space<vmem>>, %arg7: memref<1x512xf32, #tpu.memory_space<vmem>>, %arg8: memref<3xf32, #tpu.memory_space<smem>>, %arg9: memref<8x512xf32, #tpu.memory_space<vmem>>) attributes {dimension_semantics = [#tpu.dimension_semantics<arbitrary>], iteration_bounds = array<i64: 1>, scalar_prefetch = 0 : i64, scratch_operands = 0 : i64, tpu.core_type = #tpu.core_type<tc>, window_params = [{pipeline_mode = #tpu.pipeline_mode<synchronous>, transform_indices = @transform_0, window_bounds = array<i64: 8, 32>}, {pipeline_mode = #tpu.pipeline_mode<synchronous>, transform_indices = @transform_1, window_bounds = array<i64: 32, 512>}, {pipeline_mode = #tpu.pipeline_mode<synchronous>, transform_indices = @transform_2, window_bounds = array<i64: 1, 512>}, {pipeline_mode = #tpu.pipeline_mode<synchronous>, transform_indices = @transform_3, window_bounds = array<i64: 512, 512>}, {pipeline_mode = #tpu.pipeline_mode<synchronous>, transform_indices = @transform_4, window_bounds = array<i64: 1, 512>}, {pipeline_mode = #tpu.pipeline_mode<synchronous>, transform_indices = @transform_5, window_bounds = array<i64: 512, 512>}, {pipeline_mode = #tpu.pipeline_mode<synchronous>, transform_indices = @transform_6, window_bounds = array<i64: 1, 512>}, {transform_indices = @transform_7, window_bounds = array<i64: 3>}, {pipeline_mode = #tpu.pipeline_mode<synchronous>, transform_indices = @transform_8, window_bounds = array<i64: 8, 512>}]} {
    %c2 = arith.constant 2 : index
    %0 = memref.load %arg8[%c2] : memref<3xf32, #tpu.memory_space<smem>>
    %c0 = arith.constant 0 : index
    %c0_0 = arith.constant 0 : index
    %1 = vector.load %arg1[%c0, %c0_0] : memref<8x32xf32, #tpu.memory_space<vmem>>, vector<8x32xf32>
    %2 = tpu.iota {dimensions = array<i32: 1>} : vector<8x32xi32>
    %c2_i32 = arith.constant 2 : i32
    %c0_i32 = arith.constant 0 : i32
    %3 = arith.cmpi eq, %c2_i32, %c0_i32 : i32
    %c1_i32 = arith.constant 1 : i32
    %4 = arith.select %3, %c1_i32, %c2_i32 : i32
    %5 = vector.broadcast %4 : i32 to vector<8x32xi32>
    %6 = arith.remsi %2, %5 : vector<8x32xi32>
    %c0_i32_1 = arith.constant 0 : i32
    %7 = vector.broadcast %c0_i32_1 : i32 to vector<8x32xi32>
    %8 = arith.cmpi ne, %6, %7 : vector<8x32xi32>
    %c0_i32_2 = arith.constant 0 : i32
    %9 = vector.broadcast %c0_i32_2 : i32 to vector<8x32xi32>
    %10 = arith.cmpi slt, %6, %9 : vector<8x32xi32>
    %c0_i32_3 = arith.constant 0 : i32
    %11 = arith.cmpi slt, %4, %c0_i32_3 : i32
    %12 = vector.broadcast %11 : i1 to vector<8x32xi1>
    %13 = vector.broadcast %12 : vector<8x32xi1> to vector<8x32xi1>
    %14 = arith.xori %10, %13 : vector<8x32xi1>
    %15 = arith.andi %14, %8 : vector<8x32xi1>
    %16 = vector.broadcast %4 : i32 to vector<8x32xi32>
    %17 = arith.addi %6, %16 : vector<8x32xi32>
    %18 = arith.select %15, %17, %6 : vector<8x32xi1>, vector<8x32xi32>
    %c0_i32_4 = arith.constant 0 : i32
    %19 = vector.broadcast %c0_i32_4 : i32 to vector<8x32xi32>
    %20 = arith.cmpi eq, %18, %19 : vector<8x32xi32>
    %21 = math.sin %1 : vector<8x32xf32>
    %22 = math.cos %1 : vector<8x32xf32>
    %23 = arith.select %20, %21, %22 : vector<8x32xi1>, vector<8x32xf32>
    %24 = arith.truncf %23 : vector<8x32xf32> to vector<8x32xbf16>
    %c0_5 = arith.constant 0 : index
    %c0_6 = arith.constant 0 : index
    %25 = vector.load %arg2[%c0_5, %c0_6] : memref<32x512xbf16, #tpu.memory_space<vmem>>, vector<32x512xbf16>
    %cst = arith.constant dense<0.000000e+00> : vector<8x512xf32>
    %26 = tpu.matmul %24, %25, %cst {dimension_numbers = #tpu.dot_dimension_numbers<[1], [0], [0], [1], [0, 0, 1, 1], [], []>} : vector<8x32xbf16>, vector<32x512xbf16>, vector<8x512xf32> -> vector<8x512xf32>
    %c0_7 = arith.constant 0 : index
    %c0_8 = arith.constant 0 : index
    %27 = vector.load %arg3[%c0_7, %c0_8] : memref<1x512xf32, #tpu.memory_space<vmem>>, vector<1x512xf32>
    %28 = vector.broadcast %27 : vector<1x512xf32> to vector<8x512xf32>
    %29 = arith.addf %26, %28 : vector<8x512xf32>
    %cst_9 = arith.constant 0.000000e+00 : f32
    %30 = vector.broadcast %cst_9 : f32 to vector<8x512xf32>
    %31 = arith.cmpf oge, %29, %30 : vector<8x512xf32>
    %32 = vector.broadcast %0 : f32 to vector<8x512xf32>
    %33 = arith.mulf %32, %29 : vector<8x512xf32>
    %34 = arith.select %31, %29, %33 : vector<8x512xi1>, vector<8x512xf32>
    %35 = arith.truncf %34 : vector<8x512xf32> to vector<8x512xbf16>
    %c0_10 = arith.constant 0 : index
    %c0_11 = arith.constant 0 : index
    %36 = vector.load %arg4[%c0_10, %c0_11] : memref<512x512xbf16, #tpu.memory_space<vmem>>, vector<512x512xbf16>
    %cst_12 = arith.constant dense<0.000000e+00> : vector<8x512xf32>
    %37 = tpu.matmul %35, %36, %cst_12 {dimension_numbers = #tpu.dot_dimension_numbers<[1], [0], [0], [1], [0, 0, 1, 1], [], []>} : vector<8x512xbf16>, vector<512x512xbf16>, vector<8x512xf32> -> vector<8x512xf32>
    %c0_13 = arith.constant 0 : index
    %c0_14 = arith.constant 0 : index
    %38 = vector.load %arg5[%c0_13, %c0_14] : memref<1x512xf32, #tpu.memory_space<vmem>>, vector<1x512xf32>
    %39 = vector.broadcast %38 : vector<1x512xf32> to vector<8x512xf32>
    %40 = arith.addf %37, %39 : vector<8x512xf32>
    %cst_15 = arith.constant 0.000000e+00 : f32
    %41 = vector.broadcast %cst_15 : f32 to vector<8x512xf32>
    %42 = arith.cmpf oge, %40, %41 : vector<8x512xf32>
    %43 = vector.broadcast %0 : f32 to vector<8x512xf32>
    %44 = arith.mulf %43, %40 : vector<8x512xf32>
    %45 = arith.select %42, %40, %44 : vector<8x512xi1>, vector<8x512xf32>
    %46 = arith.truncf %45 : vector<8x512xf32> to vector<8x512xbf16>
    %c0_16 = arith.constant 0 : index
    %c0_17 = arith.constant 0 : index
    %47 = vector.load %arg6[%c0_16, %c0_17] : memref<512x512xbf16, #tpu.memory_space<vmem>>, vector<512x512xbf16>
    %cst_18 = arith.constant dense<0.000000e+00> : vector<8x512xf32>
    %48 = tpu.matmul %46, %47, %cst_18 {dimension_numbers = #tpu.dot_dimension_numbers<[1], [0], [0], [1], [0, 0, 1, 1], [], []>} : vector<8x512xbf16>, vector<512x512xbf16>, vector<8x512xf32> -> vector<8x512xf32>
    %c0_19 = arith.constant 0 : index
    %c0_20 = arith.constant 0 : index
    %49 = vector.load %arg7[%c0_19, %c0_20] : memref<1x512xf32, #tpu.memory_space<vmem>>, vector<1x512xf32>
    %50 = vector.broadcast %49 : vector<1x512xf32> to vector<8x512xf32>
    %51 = arith.addf %48, %50 : vector<8x512xf32>
    %c0_21 = arith.constant 0 : index
    %c0_22 = arith.constant 0 : index
    %52 = vector.load %arg9[%c0_21, %c0_22] : memref<8x512xf32, #tpu.memory_space<vmem>>, vector<8x512xf32>
    tpu.vector_store %arg9[%c0_21, %c0_22], %51 {strides = array<i32>} : memref<8x512xf32, #tpu.memory_space<vmem>>, vector<8x512xf32>,
    return
  }
  func.func @transform_0(%arg0: i32) -> (i32, i32) {
    %c0_i32 = arith.constant 0 : i32
    %c0_i32_0 = arith.constant 0 : i32
    %c0_i32_1 = arith.constant 0 : i32
    return %c0_i32, %c0_i32_0 : i32, i32
  }
  func.func @transform_1(%arg0: i32) -> (i32, i32) {
    %c0_i32 = arith.constant 0 : i32
    %c0_i32_0 = arith.constant 0 : i32
    %c0_i32_1 = arith.constant 0 : i32
    return %c0_i32, %c0_i32_0 : i32, i32
  }
  func.func @transform_2(%arg0: i32) -> (i32, i32) {
    %c0_i32 = arith.constant 0 : i32
    %c0_i32_0 = arith.constant 0 : i32
    %c0_i32_1 = arith.constant 0 : i32
    return %c0_i32, %c0_i32_0 : i32, i32
  }
  func.func @transform_3(%arg0: i32) -> (i32, i32) {
    %c0_i32 = arith.constant 0 : i32
    %c0_i32_0 = arith.constant 0 : i32
    %c0_i32_1 = arith.constant 0 : i32
    return %c0_i32, %c0_i32_0 : i32, i32
  }
  func.func @transform_4(%arg0: i32) -> (i32, i32) {
    %c0_i32 = arith.constant 0 : i32
    %c0_i32_0 = arith.constant 0 : i32
    %c0_i32_1 = arith.constant 0 : i32
    return %c0_i32, %c0_i32_0 : i32, i32
  }
  func.func @transform_5(%arg0: i32) -> (i32, i32) {
    %c0_i32 = arith.constant 0 : i32
    %c0_i32_0 = arith.constant 0 : i32
    %c0_i32_1 = arith.constant 0 : i32
    return %c0_i32, %c0_i32_0 : i32, i32
  }
  func.func @transform_6(%arg0: i32) -> (i32, i32) {
    %c0_i32 = arith.constant 0 : i32
    %c0_i32_0 = arith.constant 0 : i32
    %c0_i32_1 = arith.constant 0 : i32
    return %c0_i32, %c0_i32_0 : i32, i32
  }
  func.func @transform_7(%arg0: i32) -> i32 {
    %c0_i32 = arith.constant 0 : i32
    %c0_i32_0 = arith.constant 0 : i32
    return %c0_i32 : i32
  }
  func.func @transform_8(%arg0: i32) -> (i32, i32) {
    %c0_i32 = arith.constant 0 : i32
    %c0_i32_0 = arith.constant 0 : i32
    %c0_i32_1 = arith.constant 0 : i32
    return %c0_i32, %c0_i32_0 : i32, i32
  }
}

</mosaic_0001>

<bundles_post_ra>
// kernel: tpu_custom_call.1
= control target key start
LH: loop header
LB: loop body
LE: loop exit
PB: predicated region body
PF: predicated region fallthrough
CT: control target
= control target key end

     0   :  { %13 = vsyncpa [#allocation3], 0  ;;  %s4408_s0 = inlined_call_operand.hbm [shape: f32[8,32], index: 0, kind: input, shape index: {}]   ;;  %s4409_s1 = inlined_call_operand.hbm [shape: bf16[32,512], index: 1, kind: input, shape index: {}]   ;;  %s4410_s2 = inlined_call_operand.hbm [shape: f32[1,512], index: 2, kind: input, shape index: {}]   ;;  %s4411_s3 = inlined_call_operand.hbm [shape: bf16[512,512], index: 3, kind: input, shape index: {}]   ;;  %s4412_s4 = inlined_call_operand.hbm [shape: f32[1,512], index: 4, kind: input, shape index: {}]   ;;  %s4413_s5 = inlined_call_operand.hbm [shape: bf16[512,512], index: 5, kind: input, shape index: {}]   ;;  %s4414_s6 = inlined_call_operand.vmem [shape: f32[1,512], index: 6, kind: input, shape index: {}]   ;;  %s4415_s7 = inlined_call_operand.vmem [shape: f32[3], index: 7, kind: input, shape index: {}]   ;;  %s4416_s8 = inlined_call_operand.hbm [shape: f32[8,512], index: 8, kind: output, shape index: {}]  }
   0x1   :  { %14 = vsyncpa [#allocation7], 0 }
   0x2   :  { %15 = vsyncpa [#allocation10], 0 }
   0x3   :  { %16 = vsyncpa [#allocation13], 0 }
   0x4   :  { %17 = vsyncpa [#allocation5], 0  ;;  %s34_s29 = sshll.u32 %s4409_s1, 4  ;;  %s35_s29 = int_to_ptr.hbm [resolvable:$true] %s34_s29 }
   0x5   :  { %18 = vsyncpa [#allocation4], 0  ;;  %s4144_s30 = smov [#allocation6]   ;;  %s58_s12 = sshll.u32 %s4411_s3, 4  ;;  %s59_s12 = int_to_ptr.hbm [resolvable:$true] %s58_s12 }
   0x6   :  { %s36_s9 = sshll.u32 %s4144_s30, 4  ;;  %s4145_s13 = smov 256   ;;  %s37_s9 = int_to_ptr.vmem [resolvable:$true] %s36_s9 }
   0x7   :  { %s4146_s14 = smov 16   ;;  %s4147_s15 = smov [#allocation9]  }
   0x8   :  { %42 = dma.hbm_to_vmem [thread:$0]  %s35_s29, 1024, %s37_s9, [#allocation7], %s4145_s13, %s4145_s13, %s4146_s14  }
   0x9   :  { %s60_s16 = sshll.u32 %s4147_s15, 4  ;;  %s24_s18 = sshll.u32 %s4408_s0, 4  ;;  %s61_s16 = int_to_ptr.vmem [resolvable:$true] %s60_s16  ;;  %s25_s18 = int_to_ptr.hbm [resolvable:$true] %s24_s18 }
   0xa   :  { %66 = dma.hbm_to_vmem [thread:$0]  %s59_s12, 16384, %s61_s16, [#allocation10], %s4145_s13, %s4145_s13, %s4146_s14  }
   0xb   :  { %s48_s20 = sshll.u32 %s4410_s2, 4  ;;  %s4148_s21 = smov [#allocation2]   ;;  %s49_s20 = int_to_ptr.hbm [resolvable:$true] %s48_s20 }
   0xc   :  { %s26_s22 = sshll.u32 %s4148_s21, 4  ;;  %s4149_s23 = smov [#allocation8]   ;;  %s27_s22 = int_to_ptr.vmem [resolvable:$true] %s26_s22 }
   0xd   :  { %29 = dma.hbm_to_vmem [thread:$0]  %s25_s18, 128, %s27_s22, [#allocation3]  }
   0xe   :  { %s50_s24 = sshll.u32 %s4149_s23, 4  ;;  %s72_s0 = sshll.u32 %s4412_s4, 4  ;;  %s51_s24 = int_to_ptr.vmem [resolvable:$true] %s50_s24  ;;  %s73_s0 = int_to_ptr.hbm [resolvable:$true] %s72_s0 }
   0xf   :  { %53 = dma.hbm_to_vmem [thread:$0]  %s49_s20, 64, %s51_s24, [#allocation7]  }
  0x10   :  { %s82_s29 = sshll.u32 %s4413_s5, 4  ;;  %s4150_s30 = smov [#allocation11]   ;;  %s83_s29 = int_to_ptr.hbm [resolvable:$true] %s82_s29 }
  0x11   :  { %s74_s2 = sshll.u32 %s4150_s30, 4  ;;  %s4151_s9 = smov [#allocation12]   ;;  %s75_s2 = int_to_ptr.vmem [resolvable:$true] %s74_s2 }
  0x12   :  { %77 = dma.hbm_to_vmem [thread:$0]  %s73_s0, 64, %s75_s2, [#allocation10]  }
  0x13   :  { %s84_s10 = sshll.u32 %s4151_s9, 4  ;;  %s98_s15 = sshll.u32 %s4415_s7, 4  ;;  %s85_s10 = int_to_ptr.vmem [resolvable:$true] %s84_s10  ;;  %s99_s15 = int_to_ptr.vmem [resolvable:$true] %s98_s15 }
  0x14   :  { %90 = dma.hbm_to_vmem [thread:$0]  %s83_s29, 16384, %s85_s10, [#allocation13], %s4145_s13, %s4145_s13, %s4146_s14  }
  0x15   :  { %s4152_s4 = smov [#allocation14]  }
  0x16   :  { %101 = dma.vmem_to_smem %s99_s15, 16, %s4152_s4, [#allocation5]  }
  0x17   :  { %4132 = dma.done.wait [#allocation3], 128  }
  0x18   :  { %4133 = vsyncadd [#allocation3], 4294967168 }
  0x19   :  { %4134 = dma.done.wait [#allocation7], 1088  }
  0x1a   :  { %4135 = vsyncadd [#allocation7], 4294966208 }
  0x1b   :  { %4136 = dma.done.wait [#allocation10], 16448  }
  0x1c   :  { %4137 = vsyncadd [#allocation10], 4294950848 }
  0x1d   :  { %4138 = dma.done.wait [#allocation13], 16384  }
  0x1e   :  { %4139 = vsyncadd [#allocation13], 4294950912 }
  0x1f   :  { %4140 = dma.done.wait [#allocation5], 16  }
  0x20   :  { %4141 = vsyncadd [#allocation5], 4294967280 }
  0x21   :  { %130 = sfence }
  0x22   :  { %v2629_v0 = vld [vmem:[#allocation6 + $0x20] sm:$0xf]  ;;  %v3677_v1 = vld [vmem:[#allocation6 + $0x2c] sm:$0xf0]  ;;  %v3675_v2 = vld [vmem:[#allocation6 + $0x24] sm:$0xf] }
  0x23   :  { %v2630_v3 = vor.u32 %v3677_v1, %v2629_v0  ;;  %v2631_v4 = vld [vmem:[#allocation6 + $0x30] sm:$0xf0]  ;;  %v2637_v5 = vld [vmem:[#allocation6 + $0x28] sm:$0xf]  ;;  %v3678_v6 = vld [vmem:[#allocation6 + $0x34] sm:$0xf0] }
  0x24   :  { %v2634_v7 = vor.u32 %v3675_v2, %v2631_v4  ;;  %v2638_v8 = vor.u32 %v3678_v6, %v2637_v5  ;;  %v3676_v9 = vld [vmem:[#allocation6 + $0x2c] sm:$0xf]  ;;  %v2639_v10 = vld [vmem:[#allocation6 + $0x38] sm:$0xf0]  ;;  %v2613_v11 = vld [vmem:[#allocation6] sm:$0xf] }
  0x25   :  { %528 = vmatpush.bf16.msra.mxu0 %v2630_v3  ;;  %v2642_v12 = vor.u32 %v3676_v9, %v2639_v10  ;;  %v3673_v13 = vld [vmem:[#allocation6 + $0xc] sm:$0xf0]  ;;  %v3671_v14 = vld [vmem:[#allocation6 + $0x4] sm:$0xf]  ;;  %v2615_v15 = vld [vmem:[#allocation6 + $0x10] sm:$0xf0] }
  0x26   :  { %541 = vmatpush.bf16.msra.mxu1 %v2634_v7  ;;  %554 = vmatpush.bf16.msra.mxu2 %v2638_v8  ;;  %v2614_v16 = vor.u32 %v3673_v13, %v2613_v11  ;;  %v2618_v17 = vor.u32 %v3671_v14, %v2615_v15  ;;  %v2621_v18 = vld [vmem:[#allocation6 + $0x8] sm:$0xf]  ;;  %v3674_v19 = vld [vmem:[#allocation6 + $0x14] sm:$0xf0]  ;;  %v3672_v20 = vld [vmem:[#allocation6 + $0xc] sm:$0xf] }
  0x27   :  { %567 = vmatpush.bf16.msra.mxu3 %v2642_v12  ;;  %v2622_v21 = vor.u32 %v3674_v19, %v2621_v18  ;;  %v2623_v22 = vld [vmem:[#allocation6 + $0x18] sm:$0xf0]  ;;  %v4153_v36 = vmov 683565275   ;;  %v4154_v38 = vmov 2475754826  }
  0x28   :  { %v4236_v23 = vld [vmem:[#allocation2] sm:$0xff]  ;;  %v2626_v24 = vor.u32 %v3672_v20, %v2623_v22  ;;  %v4155_v40 = vmov 2131351028   ;;  %v4156_v42 = vmov 2102212464   ;;  %s2604_s5 = sld [smem:[#allocation14 + $0x2]] }
  0x29   :  { %v152_v25 = vand.u32 2139095040, %v4236_v23  ;;  %529 = vmatpush.bf16.msra.mxu0 %v2614_v16  ;;  %v149_v27 = vand.u32 2147483647, %v4236_v23  ;;  %v4157_v44 = vmov 920167782   ;;  %vm151_vm13 = vcmp.lt.s32.totalorder %v4236_v23, 0 }
  0x2a   :  { %542 = vmatpush.bf16.msra.mxu1 %v2618_v17  ;;  %555 = vmatpush.bf16.msra.mxu2 %v2622_v21  ;;  %v4158_v50 = vmov 1326507024   ;;  %s2590_s1 = sshll.u32 %s4416_s8, 4  ;;  %s2591_s1 = int_to_ptr.hbm [resolvable:$true] %s2590_s1 }
  0x2b   :  { %v153_v26 = vshrl.u32 %v152_v25, 23  ;;  %568 = vmatpush.bf16.msra.mxu3 %v2626_v24  ;;  %v156_v30 = vand.u32 8388607, %v149_v27  ;;  %v4159_v25 = vmov 0   ;;  %vm4279_vm12 = vcmp.le.f32.partialorder %v149_v27, 0.7853982 }
  0x2c   :  { %v3737_v27 = vld [vmem:[#allocation9 + $0x1cc] sm:$0xf0] }
  0x2d   :  { %v2605_v28 = vadd.s32 4294967169, %v153_v26  ;;  %v157_v33 = vor.u32 8388608, %v156_v30 }
  0x2f   :  { %v159_v29 = vadd.s32 1, %v2605_v28  ;;  %v4245_v52 = vshll.u32 %v157_v33, 8 }
  0x31   :  { %vm160_vm0 = vcmp.gt.s32.totalorder %v159_v29, 0  ;;  %v198_v0 = vand.u32 65535, %v4245_v52  ;;  %v199_v1 = vshrl.u32 %v4245_v52, 16 }
  0x32   :  { %v161_v31 = vsel %vm160_vm0, %v159_v29, 0 }
  0x33   :  { %v163_v32 = vand.u32 31, %v161_v31  ;;  %v4242_v34 = vshrl.u32 %v161_v31, 5 }
  0x35   :  { %v164_v35 = vsub.s32 32, %v163_v32  ;;  %v166_v37 = vshll.u32 %v4153_v36, %v163_v32  ;;  %v169_v39 = vshll.u32 %v4154_v38, %v163_v32  ;;  %v172_v41 = vshll.u32 %v4155_v40, %v163_v32 }
  0x36   :  { %v175_v43 = vshll.u32 %v4156_v42, %v163_v32  ;;  %v178_v45 = vshll.u32 %v4157_v44, %v163_v32  ;;  %vm181_vm1 = vcmp.lt.s32.totalorder %v4242_v34, 1  ;;  %vm184_vm2 = vcmp.lt.s32.totalorder %v4242_v34, 4 }
  0x37   :  { %v167_v46 = vshrl.u32 %v4154_v38, %v164_v35  ;;  %v170_v47 = vshrl.u32 %v4155_v40, %v164_v35  ;;  %v173_v48 = vshrl.u32 %v4156_v42, %v164_v35  ;;  %v176_v49 = vshrl.u32 %v4157_v44, %v164_v35 }
  0x38   :  { %v179_v51 = vshrl.u32 %v4158_v50, %v164_v35  ;;  %vm183_vm3 = vcmp.lt.s32.totalorder %v4242_v34, 3  ;;  %vm182_vm4 = vcmp.lt.s32.totalorder %v4242_v34, 2  ;;  %v165_v8 = vshrl.u32 %v4153_v36, %v164_v35 }
  0x39   :  { %v168_v53 = vor.u32 %v167_v46, %v166_v37  ;;  %v171_v54 = vor.u32 %v170_v47, %v169_v39  ;;  %v174_v55 = vor.u32 %v173_v48, %v172_v41  ;;  %v177_v56 = vor.u32 %v176_v49, %v175_v43 }
  0x3a   :  { %v180_v57 = vor.u32 %v179_v51, %v178_v45 }
  0x3b   :  { %v189_v58 = vsel %vm181_vm1, %v168_v53, %v171_v54  ;;  %v193_v59 = vsel %vm181_vm1, %v171_v54, %v174_v55  ;;  %v190_v60 = vsel %vm184_vm2, %v177_v56, 920167782  ;;  %v185_v21 = vsel %vm181_vm1, %v165_v8, %v168_v53 }
  0x3c   :  { %v194_v61 = vsel %vm184_vm2, %v180_v57, 1326507024  ;;  %v191_v62 = vsel %vm183_vm3, %v174_v55, %v190_v60  ;;  %v186_v24 = vsel %vm184_vm2, %v174_v55, 2102212464 }
  0x3d   :  { %v195_v63 = vsel %vm183_vm3, %v177_v56, %v194_v61  ;;  %v192_v2 = vsel %vm182_vm4, %v189_v58, %v191_v62  ;;  %v187_v36 = vsel %vm183_vm3, %v171_v54, %v186_v24 }
  0x3e   :  { %v196_v3 = vsel %vm182_vm4, %v193_v59, %v195_v63  ;;  %v222_v6 = vand.u32 65535, %v192_v2  ;;  %v223_v7 = vshrl.u32 %v192_v2, 16  ;;  %v188_v44 = vsel %vm182_vm4, %v185_v21, %v187_v36  ;;  %v2857_v36 = vld [vmem:[#allocation9 + $0x1a0] sm:$0xf] }
  0x3f   :  { %v200_v4 = vand.u32 65535, %v196_v3  ;;  %v201_v5 = vshrl.u32 %v196_v3, 16  ;;  %v242_v48 = vmul.u32 %v4245_v52, %v188_v44  ;;  %v3801_v44 = vld [vmem:[#allocation9 + $0x3cc] sm:$0xf0] }
  0x40   :  { %v224_v12 = vmul.u32 %v222_v6, %v198_v0  ;;  %v225_v13 = vmul.u32 %v223_v7, %v198_v0  ;;  %v226_v14 = vmul.u32 %v222_v6, %v199_v1  ;;  %v227_v18 = vmul.u32 %v223_v7, %v199_v1 }
  0x41   :  { %v202_v9 = vmul.u32 %v200_v4, %v198_v0  ;;  %v203_v10 = vmul.u32 %v201_v5, %v198_v0  ;;  %v204_v11 = vmul.u32 %v200_v4, %v199_v1  ;;  %v205_v15 = vmul.u32 %v201_v5, %v199_v1 }
  0x42   :  { %v228_v19 = vshll.u32 %v225_v13, 16  ;;  %v230_v20 = vshll.u32 %v226_v14, 16  ;;  %v229_v33 = vshrl.u32 %v225_v13, 16  ;;  %v231_v40 = vshrl.u32 %v226_v14, 16 }
  0x43   :  { %v206_v16 = vshll.u32 %v203_v10, 16  ;;  %v208_v17 = vshll.u32 %v204_v11, 16  ;;  %v207_v29 = vshrl.u32 %v203_v10, 16  ;;  %v209_v37 = vshrl.u32 %v204_v11, 16  ;;  %v2761_v10 = vld [vmem:[#allocation9 + $0xe0] sm:$0xf] }
  0x44   :  { %vm232_vm6 = vc.u32 %v224_v12, %v228_v19  ;;  %v234_v28 = vadd.s32 %v228_v19, %v224_v12  ;;  %v3709_v11 = vld [vmem:[#allocation9 + $0xec] sm:$0xf0]  ;;  %v2889_v12 = vld [vmem:[#allocation9 + $0x1e0] sm:$0xf] }
  0x45   :  { %vm210_vm5 = vc.u32 %v202_v9, %v206_v16  ;;  %v212_v22 = vadd.s32 %v206_v16, %v202_v9  ;;  %v233_v31 = vsel %vm232_vm6, 1, %v4159_v25  ;;  %v2762_v14 = vor.u32 %v3709_v11, %v2761_v10  ;;  %v2745_v16 = vld [vmem:[#allocation9 + $0xc0] sm:$0xf]  ;;  %v3793_v11 = vld [vmem:[#allocation9 + $0x38c] sm:$0xf0] }
  0x46   :  { %v211_v26 = vsel %vm210_vm5, 1, %v4159_v25  ;;  %v235_v35 = vadd.s32 %v233_v31, %v227_v18  ;;  %vm236_vm8 = vc.u32 %v234_v28, %v230_v20  ;;  %v238_v43 = vadd.s32 %v234_v28, %v230_v20  ;;  %v2873_v19 = vld [vmem:[#allocation9 + $0x1c0] sm:$0xf] }
  0x47   :  { %v213_v30 = vadd.s32 %v211_v26, %v205_v15  ;;  %vm214_vm7 = vc.u32 %v212_v22, %v208_v17  ;;  %v237_v39 = vsel %vm236_vm8, 1, %v4159_v25  ;;  %v3741_v15 = vld [vmem:[#allocation9 + $0x1ec] sm:$0xf0]  ;;  %v3017_v20 = vld [vmem:[#allocation9 + $0x2e0] sm:$0xf]  ;;  %1369 = vmatpush.bf16.msrb.mxu0 %v2762_v14  ;;  %v2874_v28 = vor.u32 %v3737_v27, %v2873_v19 }
  0x48   :  { %v215_v32 = vsel %vm214_vm7, 1, %v4159_v25  ;;  %v239_v41 = vadd.s32 %v237_v39, %v235_v35  ;;  %v3705_v17 = vld [vmem:[#allocation9 + $0xcc] sm:$0xf0]  ;;  %v2890_v18 = vor.u32 %v3741_v15, %v2889_v12  ;;  %v3145_v26 = vld [vmem:[#allocation9 + $0x3e0] sm:$0xf]  ;;  %v134_v39 = vlaneseq }
  0x49   :  { %v217_v38 = vadd.s32 %v215_v32, %v213_v30  ;;  %v2746_v24 = vor.u32 %v3705_v17, %v2745_v16  ;;  %v3773_v25 = vld [vmem:[#allocation9 + $0x2ec] sm:$0xf0]  ;;  %v2729_v31 = vld [vmem:[#allocation9 + $0xa0] sm:$0xf]  ;;  %vm292_vm5 = vweird.f32 %v4236_v23  ;;  %vm518_vm6 = vcmask 261120  }
  0x4a   :  { %v240_v45 = vadd.s32 %v239_v41, %v229_v33  ;;  %1382 = vmatpush.bf16.msrb.mxu1 %v2890_v18  ;;  %v3805_v30 = vld [vmem:[#allocation9 + $0x3ec] sm:$0xf0]  ;;  %v3097_v10 = vld [vmem:[#allocation9 + $0x380] sm:$0xf] }
  0x4b   :  { %v218_v42 = vadd.s32 %v217_v38, %v207_v29  ;;  %v3018_v29 = vor.u32 %v3773_v25, %v3017_v20  ;;  %v3701_v32 = vld [vmem:[#allocation9 + $0xac] sm:$0xf0]  ;;  %v3146_v35 = vor.u32 %v3805_v30, %v3145_v26  ;;  %v3001_v38 = vld [vmem:[#allocation9 + $0x2c0] sm:$0xf]  ;;  %1370 = vmatpush.bf16.msrb.mxu0 %v2746_v24  ;;  %v3098_v27 = vor.u32 %v3793_v11, %v3097_v10 }
  0x4c   :  { %v241_v47 = vadd.s32 %v240_v45, %v231_v40  ;;  %v2730_v41 = vor.u32 %v3701_v32, %v2729_v31  ;;  %v2681_v15 = vld [vmem:[#allocation9 + $0x40] sm:$0xf]  ;;  %v3689_v16 = vld [vmem:[#allocation9 + $0x4c] sm:$0xf0] }
  0x4d   :  { %v219_v46 = vadd.s32 %v218_v42, %v209_v37  ;;  %v3733_v37 = vld [vmem:[#allocation9 + $0x1ac] sm:$0xf0]  ;;  %1395 = vmatpush.bf16.msrb.mxu2 %v3018_v29  ;;  %1408 = vmatpush.bf16.msrb.mxu3 %v3146_v35  ;;  %v2953_v20 = vld [vmem:[#allocation9 + $0x260] sm:$0xf] }
  0x4e   :  { %v245_v49 = vadd.s32 1, %v241_v47  ;;  %v3769_v42 = vld [vmem:[#allocation9 + $0x2cc] sm:$0xf0]  ;;  %1383 = vmatpush.bf16.msrb.mxu1 %v2874_v28  ;;  %v3081_v25 = vld [vmem:[#allocation9 + $0x360] sm:$0xf] }
  0x4f   :  { %vm244_vm9 = vc.u32 %v219_v46, %v238_v43  ;;  %v243_v34 = vadd.s32 %v238_v43, %v219_v46  ;;  %v3129_v43 = vld [vmem:[#allocation9 + $0x3c0] sm:$0xf]  ;;  %v3002_v46 = vor.u32 %v3769_v42, %v3001_v38  ;;  %1371 = vmatpush.bf16.msrb.mxu0 %v2730_v41  ;;  %v3757_v24 = vld [vmem:[#allocation9 + $0x26c] sm:$0xf0]  ;;  %v2682_v38 = vor.u32 %v3689_v16, %v2681_v15 }
  0x50   :  { %v246_v50 = vsel %vm244_vm9, %v245_v49, %v241_v47  ;;  %v3130_v47 = vor.u32 %v3801_v44, %v3129_v43  ;;  %v3697_v49 = vld [vmem:[#allocation9 + $0x8c] sm:$0xf0]  ;;  %v2954_v32 = vor.u32 %v3757_v24, %v2953_v20  ;;  %v2937_v41 = vld [vmem:[#allocation9 + $0x240] sm:$0xf]  ;;  %v3735_v24 = vld [vmem:[#allocation9 + $0x1c4] sm:$0xf] }
  0x51   :  { %v247_v51 = vadd.s32 %v246_v50, %v242_v48  ;;  %v2713_v48 = vld [vmem:[#allocation9 + $0x80] sm:$0xf]  ;;  %1396 = vmatpush.bf16.msrb.mxu2 %v3002_v46  ;;  %v3789_v26 = vld [vmem:[#allocation9 + $0x36c] sm:$0xf0] }
  0x52   :  { %v2841_v50 = vld [vmem:[#allocation9 + $0x180] sm:$0xf]  ;;  %1409 = vmatpush.bf16.msrb.mxu3 %v3130_v47  ;;  %v3721_v30 = vld [vmem:[#allocation9 + $0x14c] sm:$0xf0] }
  0x53   :  { %v248_v53 = vadd.s32 536870912, %v247_v51  ;;  %v3685_v35 = vld [vmem:[#allocation9 + $0x2c] sm:$0xf0]  ;;  %v3065_v44 = vld [vmem:[#allocation9 + $0x340] sm:$0xf] }
  0x54   :  { %v3753_v42 = vld [vmem:[#allocation9 + $0x24c] sm:$0xf0] }
  0x55   :  { %v249_v54 = vshrl.u32 %v248_v53, 30  ;;  %v3729_v53 = vld [vmem:[#allocation9 + $0x18c] sm:$0xf0] }
  0x56   :  { %v3781_v11 = vld [vmem:[#allocation9 + $0x32c] sm:$0xf0] }
  0x57   :  { %v250_v55 = vshll.u32 %v249_v54, 30  ;;  %v273_v4 = vsub.s32 4, %v249_v54 }
  0x59   :  { %v251_v56 = vsub.s32 %v247_v51, %v250_v55  ;;  %v274_v9 = vsel %vm151_vm13, %v273_v4, %v249_v54  ;;  %v2858_v51 = vor.u32 %v3733_v37, %v2857_v36  ;;  %v2985_v54 = vld [vmem:[#allocation9 + $0x2a0] sm:$0xf]  ;;  %v3765_v55 = vld [vmem:[#allocation9 + $0x2ac] sm:$0xf0] }
  0x5a   :  { %v276_v22 = vsel %vm4279_vm12, 0, %v274_v9  ;;  %v2825_v4 = vld [vmem:[#allocation9 + $0x160] sm:$0xf]  ;;  %v3725_v9 = vld [vmem:[#allocation9 + $0x16c] sm:$0xf0] }
  0x5b   :  { %vm252_vm10 = vcmp.lt.s32.totalorder %v251_v56, 0  ;;  %v253_v57 = vsub.s32 0, %v251_v56  ;;  %1384 = vmatpush.bf16.msrb.mxu1 %v2858_v51  ;;  %v2938_v51 = vor.u32 %v3753_v42, %v2937_v41  ;;  %v3731_v41 = vld [vmem:[#allocation9 + $0x1a4] sm:$0xf]  ;;  %v2859_v42 = vld [vmem:[#allocation9 + $0x1b0] sm:$0xf0] }
  0x5d   :  { %v254_v58 = vsel %vm252_vm10, %v253_v57, %v251_v56 }
  0x5e   :  { %v255_v59 = vclz %v254_v58  ;;  %v3113_v58 = vld [vmem:[#allocation9 + $0x3a0] sm:$0xf] }
  0x60   :  { %v2606_v60 = vadd.s32 4294967294, %v255_v59  ;;  %v4297_v59 = vand.u32 127, %v134_v39  ;;  %v3082_v39 = vor.u32 %v3789_v26, %v3081_v25  ;;  %v2875_v25 = vld [vmem:[#allocation9 + $0x1d0] sm:$0xf0] }
  0x62   :  { %vm2607_vm11 = vcmp.lt.s32.totalorder %v2606_v60, 0  ;;  %v140_v31 = vand.u32 1, %v4297_v59 }
  0x63   :  { %v258_v61 = vsel %vm2607_vm11, 0, %v2606_v60  ;;  %v293_v60 = vadd.s32 3, %v276_v22 }
  0x64   :  { %v259_v62 = vsub.s32 32, %v258_v61  ;;  %v260_v63 = vshll.u32 %v251_v56, %v258_v61  ;;  %v263_v0 = vsub.s32 4294967266, %v258_v61  ;;  %v3797_v61 = vld [vmem:[#allocation9 + $0x3ac] sm:$0xf0]  ;;  %vm4315_vm4 = vcmp.eq.s32.totalorder %v140_v31, 0 }
  0x65   :  { %v4299_v12 = vand.u32 3, %v293_v60  ;;  %v2649_v60 = vld [vmem:[#allocation9] sm:$0xf]  ;;  %v3147_v31 = vld [vmem:[#allocation9 + $0x3f0] sm:$0xf0] }
  0x66   :  { %v261_v52 = vshrl.u32 %v243_v34, %v259_v62  ;;  %v264_v1 = vadd.s32 127, %v263_v0  ;;  %v2986_v34 = vor.u32 %v3765_v55, %v2985_v54  ;;  %v2697_v62 = vld [vmem:[#allocation9 + $0x60] sm:$0xf] }
  0x67   :  { %vm295_vm14 = vcmp.lt.s32.totalorder %v4299_v12, 2  ;;  %vm299_vm15 = vcmp.eq.s32.totalorder %v4299_v12, 2  ;;  %vm296_vm1 = vcmp.eq.s32.totalorder %v4299_v12, 0  ;;  %v2905_v12 = vld [vmem:[#allocation9 + $0x200] sm:$0xf] }
  0x68   :  { %v262_v2 = vor.u32 %v261_v52, %v260_v63  ;;  %v265_v3 = vshll.u32 %v264_v1, 23  ;;  %v2714_v52 = vor.u32 %v3697_v49, %v2713_v48  ;;  %v3114_v1 = vor.u32 %v3797_v61, %v3113_v58  ;;  %1397 = vmatpush.bf16.msrb.mxu2 %v2986_v34  ;;  %v2793_v48 = vld [vmem:[#allocation9 + $0x120] sm:$0xf]  ;;  %v3717_v49 = vld [vmem:[#allocation9 + $0x12c] sm:$0xf0] }
  0x69   :  { %v2794_v59 = vor.u32 %v3717_v49, %v2793_v48  ;;  %v2987_v48 = vld [vmem:[#allocation9 + $0x2b0] sm:$0xf0] }
  0x6a   :  { %v266_v5 = vor.u32 4788187, %v265_v3  ;;  %v269_v6 = vcvt.s32.f32 %v262_v2  ;;  %v3693_v2 = vld [vmem:[#allocation9 + $0x6c] sm:$0xf0]  ;;  %v2842_v3 = vor.u32 %v3729_v53, %v2841_v50  ;;  %1372 = vmatpush.bf16.msrb.mxu0 %v2714_v52  ;;  %1410 = vmatpush.bf16.msrb.mxu3 %v3114_v1  ;;  %v3115_v58 = vld [vmem:[#allocation9 + $0x3b0] sm:$0xf0] }
  0x6b   :  { %v2698_v19 = vor.u32 %v3693_v2, %v2697_v62  ;;  %v3681_v62 = vld [vmem:[#allocation9 + $0xc] sm:$0xf0]  ;;  %v3707_v2 = vld [vmem:[#allocation9 + $0xe4] sm:$0xf] }
  0x6c   :  { %v267_v8 = vand.u32 2147483647, %v266_v5  ;;  %v2969_v5 = vld [vmem:[#allocation9 + $0x280] sm:$0xf]  ;;  %1385 = vmatpush.bf16.msrb.mxu1 %v2842_v3  ;;  %v2763_v3 = vld [vmem:[#allocation9 + $0xf0] sm:$0xf0]  ;;  %v2650_v15 = vor.u32 %v3681_v62, %v2649_v60 }
  0x6d   :  { %v2971_v60 = vld [vmem:[#allocation9 + $0x290] sm:$0xf0]  ;;  %v3691_v62 = vld [vmem:[#allocation9 + $0x64] sm:$0xf] }
  0x6e   :  { %v270_v13 = vmul.f32 %v269_v6, %v267_v8  ;;  %v3761_v6 = vld [vmem:[#allocation9 + $0x28c] sm:$0xf0]  ;;  %1373 = vmatpush.bf16.msrb.mxu0 %v2698_v19  ;;  %1411 = vmatpush.bf16.msrb.mxu3 %v3098_v27  ;;  %v2766_v19 = vor.u32 %v3707_v2, %v2763_v3  ;;  %v3791_v3 = vld [vmem:[#allocation9 + $0x384] sm:$0xf] }
  0x6f   :  { %v2970_v14 = vor.u32 %v3761_v6, %v2969_v5 }
  0x70   :  { %v271_v21 = vxor.u32 2147483648, %v270_v13 }
  0x71   :  { %1398 = vmatpush.bf16.msrb.mxu2 %v2970_v14 }
  0x72   :  { %v272_v33 = vsel %vm151_vm13, %v271_v21, %v270_v13  ;;  %v4301_v13 = vand.u32 3, %v276_v22  ;;  %v2826_v21 = vor.u32 %v3725_v9, %v2825_v4  ;;  %v2809_v22 = vld [vmem:[#allocation9 + $0x140] sm:$0xf]  ;;  %1374 = vmatpush.bf16.msrb.mxu0 %v2682_v38  ;;  %1412 = vmatpush.bf16.msrb.mxu3 %v3082_v39  ;;  %v3739_v4 = vld [vmem:[#allocation9 + $0x1e4] sm:$0xf] }
  0x73   :  { %v4293_v40 = vsel %vm4279_vm12, %v4236_v23, %v272_v33  ;;  %v2665_v33 = vld [vmem:[#allocation9 + $0x20] sm:$0xf]  ;;  %v2810_v43 = vor.u32 %v3721_v30, %v2809_v22  ;;  %v3703_v23 = vld [vmem:[#allocation9 + $0xc4] sm:$0xf]  ;;  %v2731_v39 = vld [vmem:[#allocation9 + $0xb0] sm:$0xf0] }
  0x74   :  { %v277_v45 = vmul.f32 %v4293_v40, %v4293_v40  ;;  %vm453_vm0 = vcmp.eq.s32.totalorder %v4301_v13, 2  ;;  %1386 = vmatpush.bf16.msrb.mxu1 %v2826_v21  ;;  %vm449_vm2 = vcmp.lt.s32.totalorder %v4301_v13, 2  ;;  %vm450_vm3 = vcmp.eq.s32.totalorder %v4301_v13, 0  ;;  %v3049_v9 = vld [vmem:[#allocation9 + $0x320] sm:$0xf] }
  0x75   :  { %1399 = vmatpush.bf16.msrb.mxu2 %v2954_v32  ;;  %v2666_v50 = vor.u32 %v3685_v35, %v2665_v33  ;;  %v3745_v13 = vld [vmem:[#allocation9 + $0x20c] sm:$0xf0]  ;;  %v3050_v20 = vor.u32 %v3781_v11, %v3049_v9  ;;  %v2747_v21 = vld [vmem:[#allocation9 + $0xd0] sm:$0xf0]  ;;  %v3803_v30 = vld [vmem:[#allocation9 + $0x3e4] sm:$0xf] }
  0x76   :  { %v278_v56 = vmul.f32 -0.001358992, %v277_v45  ;;  %v285_v57 = vmul.f32 -0.00019511016, %v277_v45  ;;  %v2906_v26 = vor.u32 %v3745_v13, %v2905_v12  ;;  %v3767_v32 = vld [vmem:[#allocation9 + $0x2c4] sm:$0xf]  ;;  %v2750_v35 = vor.u32 %v3703_v23, %v2747_v21 }
  0x77   :  { %1375 = vmatpush.bf16.msrb.mxu0 %v2666_v50  ;;  %v3003_v33 = vld [vmem:[#allocation9 + $0x2d0] sm:$0xf0]  ;;  %v2862_v50 = vor.u32 %v3731_v41, %v2859_v42  ;;  %v3719_v9 = vld [vmem:[#allocation9 + $0x144] sm:$0xf] }
  0x78   :  { %v279_v63 = vadd.f32 0.041655596, %v278_v56  ;;  %v286_v0 = vadd.f32 0.008332121, %v285_v57  ;;  %v2921_v56 = vld [vmem:[#allocation9 + $0x220] sm:$0xf]  ;;  %1387 = vmatpush.bf16.msrb.mxu1 %v2810_v43  ;;  %v3150_v43 = vor.u32 %v3803_v30, %v3147_v31 }
  0x79   :  { %v3749_v57 = vld [vmem:[#allocation9 + $0x22c] sm:$0xf0]  ;;  %1400 = vmatpush.bf16.msrb.mxu2 %v2938_v51  ;;  %v3695_v51 = vld [vmem:[#allocation9 + $0x84] sm:$0xf]  ;;  %v2667_v23 = vld [vmem:[#allocation9 + $0x30] sm:$0xf0] }
  0x7a   :  { %v280_v7 = vmul.f32 %v279_v63, %v277_v45  ;;  %v287_v8 = vmul.f32 %v286_v0, %v277_v45  ;;  %v2777_v63 = vld [vmem:[#allocation9 + $0x100] sm:$0xf]  ;;  %v3713_v0 = vld [vmem:[#allocation9 + $0x10c] sm:$0xf0]  ;;  %v2922_v5 = vor.u32 %v3749_v57, %v2921_v56  ;;  %v3795_v57 = vld [vmem:[#allocation9 + $0x3a4] sm:$0xf] }
  0x7b   :  { %v2778_v16 = vor.u32 %v3713_v0, %v2777_v63  ;;  %1376 = vmatpush.bf16.msrb.mxu0 %v2650_v15  ;;  %v2699_v63 = vld [vmem:[#allocation9 + $0x70] sm:$0xf0]  ;;  %v3723_v0 = vld [vmem:[#allocation9 + $0x164] sm:$0xf] }
  0x7c   :  { %v281_v17 = vadd.f32 -0.4999988, %v280_v7  ;;  %v288_v18 = vadd.f32 -0.16666654, %v287_v8  ;;  %v2891_v8 = vld [vmem:[#allocation9 + $0x1f0] sm:$0xf0]  ;;  %1388 = vmatpush.bf16.msrb.mxu1 %v2794_v59 }
  0x7d   :  { %v2894_v27 = vor.u32 %v3739_v4, %v2891_v8  ;;  %1401 = vmatpush.bf16.msrb.mxu2 %v2922_v5  ;;  %v3759_v59 = vld [vmem:[#allocation9 + $0x284] sm:$0xf]  ;;  %v3099_v4 = vld [vmem:[#allocation9 + $0x390] sm:$0xf0]  ;;  %v2702_v5 = vor.u32 %v3691_v62, %v2699_v63  ;;  %v3742_v62 = vld [vmem:[#allocation9 + $0x1f4] sm:$0xf0] }
  0x7e   :  { %v282_v28 = vmul.f32 %v281_v17, %v277_v45  ;;  %v289_v29 = vmul.f32 %v288_v18, %v277_v45  ;;  %v3785_v45 = vld [vmem:[#allocation9 + $0x34c] sm:$0xf0]  ;;  %v3771_v17 = vld [vmem:[#allocation9 + $0x2e4] sm:$0xf]  ;;  %v3019_v18 = vld [vmem:[#allocation9 + $0x2f0] sm:$0xf0]  ;;  %v2974_v2 = vor.u32 %v3759_v59, %v2971_v60  ;;  %v3102_v11 = vor.u32 %v3791_v3, %v3099_v4 }
  0x7f   :  { %v3022_v22 = vor.u32 %v3771_v17, %v3019_v18  ;;  %v2683_v8 = vld [vmem:[#allocation9 + $0x50] sm:$0xf0]  ;;  %v3779_v42 = vld [vmem:[#allocation9 + $0x324] sm:$0xf]  ;;  %v2769_v60 = vld [vmem:[#allocation9 + $0xe8] sm:$0xf] }
  0x80   :  { %v283_v36 = vadd.f32 1.0, %v282_v28  ;;  %v290_v37 = vadd.f32 1.0, %v289_v29  ;;  %v3033_v28 = vld [vmem:[#allocation9 + $0x300] sm:$0xf]  ;;  %v3777_v29 = vld [vmem:[#allocation9 + $0x30c] sm:$0xf0]  ;;  %1389 = vmatpush.bf16.msrb.mxu1 %v2778_v16 }
  0x81   :  { %1402 = vmatpush.bf16.msrb.mxu2 %v2906_v26  ;;  %v3034_v38 = vor.u32 %v3777_v29, %v3033_v28  ;;  %v2955_v15 = vld [vmem:[#allocation9 + $0x270] sm:$0xf0]  ;;  %v3787_v16 = vld [vmem:[#allocation9 + $0x364] sm:$0xf] }
  0x82   :  { %v291_v46 = vmul.f32 %v290_v37, %v4293_v40  ;;  %v300_v47 = vxor.u32 2147483648, %v283_v36  ;;  %v3066_v40 = vor.u32 %v3785_v45, %v3065_v44  ;;  %v3699_v37 = vld [vmem:[#allocation9 + $0xa4] sm:$0xf]  ;;  %v3006_v44 = vor.u32 %v3767_v32, %v3003_v33  ;;  %v3083_v18 = vld [vmem:[#allocation9 + $0x370] sm:$0xf0] }
  0x83   :  { %v3799_v45 = vld [vmem:[#allocation9 + $0x3c4] sm:$0xf]  ;;  %v2734_v49 = vor.u32 %v3699_v37, %v2731_v39  ;;  %v2939_v28 = vld [vmem:[#allocation9 + $0x250] sm:$0xf0] }
  0x84   :  { %v297_v53 = vxor.u32 2147483648, %v291_v46  ;;  %v301_v54 = vsel %vm299_vm15, %v300_v47, %v291_v46  ;;  %v455_v55 = vsel %vm453_vm0, %v300_v47, %v291_v46  ;;  %1413 = vmatpush.bf16.msrb.mxu3 %v3066_v40  ;;  %v3131_v46 = vld [vmem:[#allocation9 + $0x3d0] sm:$0xf0]  ;;  %v3763_v47 = vld [vmem:[#allocation9 + $0x2a4] sm:$0xf] }
  0x85   :  { %v3134_v40 = vor.u32 %v3799_v45, %v3131_v46  ;;  %v2990_v56 = vor.u32 %v3763_v47, %v2987_v48  ;;  %v3751_v26 = vld [vmem:[#allocation9 + $0x244] sm:$0xf]  ;;  %v3067_v30 = vld [vmem:[#allocation9 + $0x350] sm:$0xf0] }
  0x86   :  { %v298_v34 = vsel %vm296_vm1, %v283_v36, %v297_v53  ;;  %v452_v61 = vsel %vm450_vm3, %v283_v36, %v297_v53  ;;  %v2878_v36 = vor.u32 %v3735_v24, %v2875_v25  ;;  %v2715_v53 = vld [vmem:[#allocation9 + $0x90] sm:$0xf0]  ;;  %v3783_v29 = vld [vmem:[#allocation9 + $0x344] sm:$0xf] }
  0x87   :  { %v302_v52 = vsel %vm295_vm14, %v298_v34, %v301_v54  ;;  %v456_v1 = vsel %vm449_vm2, %v452_v61, %v455_v55  ;;  %v3727_v54 = vld [vmem:[#allocation9 + $0x184] sm:$0xf]  ;;  %v2843_v55 = vld [vmem:[#allocation9 + $0x190] sm:$0xf0]  ;;  %v2718_v34 = vor.u32 %v3695_v51, %v2715_v53  ;;  %v3070_v31 = vor.u32 %v3783_v29, %v3067_v30  ;;  %v468_v53 = vld [vmem:[#allocation8] sm:$0xf] }
  0x88   :  { %v303_v6 = vsel %vm292_vm5, nan, %v302_v52  ;;  %v457_v7 = vsel %vm292_vm5, nan, %v456_v1  ;;  %1414 = vmatpush.bf16.msrb.mxu3 %v3050_v20  ;;  %v2846_v61 = vor.u32 %v3727_v54, %v2843_v55  ;;  %v2827_v52 = vld [vmem:[#allocation9 + $0x170] sm:$0xf0]  ;;  %v3118_v1 = vor.u32 %v3795_v57, %v3115_v58  ;;  %v3715_v20 = vld [vmem:[#allocation9 + $0x124] sm:$0xf] }
  0x89   :  { %v458_v10 = vsel %vm4315_vm4, %v303_v6, %v457_v7  ;;  %v2830_v6 = vor.u32 %v3723_v0, %v2827_v52  ;;  %v3687_v7 = vld [vmem:[#allocation9 + $0x44] sm:$0xf]  ;;  %v2795_v24 = vld [vmem:[#allocation9 + $0x130] sm:$0xf0]  ;;  %v470_v54 = vperm.slane %v468_v53, 0  ;;  %v471_v55 = vperm.slane %v468_v53, 1 }
  0x8a   :  { %v459_v14 = vpack.c.bf16 %v458_v10, %v458_v10  ;;  %v2811_v10 = vld [vmem:[#allocation9 + $0x150] sm:$0xf0]  ;;  %v2686_v12 = vor.u32 %v3687_v7, %v2683_v8  ;;  %v2798_v25 = vor.u32 %v3715_v20, %v2795_v24  ;;  %v3679_v32 = vld [vmem:[#allocation9 + $0x4] sm:$0xf]  ;;  %v472_v52 = vperm.slane %v468_v53, 2 }
  0x8b   :  { %v2814_v13 = vor.u32 %v3719_v9, %v2811_v10  ;;  %v2651_v33 = vld [vmem:[#allocation9 + $0x10] sm:$0xf0]  ;;  %v3747_v39 = vld [vmem:[#allocation9 + $0x224] sm:$0xf]  ;;  %v3706_v9 = vld [vmem:[#allocation9 + $0xd4] sm:$0xf0] }
  0x8c   :  { %2643 = vmatmul.msk.bf16.vlgmr.msra.gmra.mxu0 %vm518_vm6, %v459_v14  ;;  %2644 = vmatmul.msk.bf16.vlgmr.msra.gmra.mxu1 %vm518_vm6, %v459_v14  ;;  %v2779_v37 = vld [vmem:[#allocation9 + $0x110] sm:$0xf0]  ;;  %v3743_v46 = vld [vmem:[#allocation9 + $0x204] sm:$0xf]  ;;  %v2881_v10 = vld [vmem:[#allocation9 + $0x1c8] sm:$0xf] }
  0x8d   :  { %2645 = vmatmul.msk.bf16.vlgmr.msra.gmra.mxu2 %vm518_vm6, %v459_v14  ;;  %2646 = vmatmul.msk.bf16.vlgmr.msra.gmra.mxu3 %vm518_vm6, %v459_v14  ;;  %v3755_v14 = vld [vmem:[#allocation9 + $0x264] sm:$0xf]  ;;  %v2923_v41 = vld [vmem:[#allocation9 + $0x230] sm:$0xf0]  ;;  %v2737_v24 = vld [vmem:[#allocation9 + $0xa8] sm:$0xf] }
  0x8e   :  { %1421 = vmatpush.bf16.msra.mxu0 %v2766_v19  ;;  %1434 = vmatpush.bf16.msra.mxu1 %v2894_v27  ;;  %v2958_v17 = vor.u32 %v3755_v14, %v2955_v15  ;;  %v3086_v19 = vor.u32 %v3787_v16, %v3083_v18  ;;  %v3683_v27 = vld [vmem:[#allocation9 + $0x24] sm:$0xf]  ;;  %v2907_v47 = vld [vmem:[#allocation9 + $0x210] sm:$0xf0]  ;;  %v3025_v18 = vld [vmem:[#allocation9 + $0x2e8] sm:$0xf] }
  0x8f   :  { %1447 = vmatpush.bf16.msra.mxu2 %v3022_v22  ;;  %1415 = vmatpush.bf16.msrb.mxu3 %v3034_v38  ;;  %v2670_v21 = vor.u32 %v3683_v27, %v2667_v23  ;;  %v2942_v22 = vor.u32 %v3751_v26, %v2939_v28  ;;  %v2910_v48 = vor.u32 %v3743_v46, %v2907_v47  ;;  %v3153_v27 = vld [vmem:[#allocation9 + $0x3e8] sm:$0xf]  ;;  %v3730_v47 = vld [vmem:[#allocation9 + $0x194] sm:$0xf0] }
  0x90   :  { %v2865_v29 = vld [vmem:[#allocation9 + $0x1a8] sm:$0xf] }
  0x91   :  { %v2849_v46 = vld [vmem:[#allocation9 + $0x188] sm:$0xf] }
  0x92   :  { %1422 = vmatpush.bf16.msra.mxu0 %v2750_v35  ;;  %1435 = vmatpush.bf16.msra.mxu1 %v2878_v36  ;;  %v3711_v35 = vld [vmem:[#allocation9 + $0x104] sm:$0xf]  ;;  %v2654_v36 = vor.u32 %v3679_v32, %v2651_v33 }
  0x93   :  { %1460 = vmatpush.bf16.msra.mxu3 %v3150_v43  ;;  %1448 = vmatpush.bf16.msra.mxu2 %v3006_v44  ;;  %v2782_v38 = vor.u32 %v3711_v35, %v2779_v37  ;;  %v2926_v43 = vor.u32 %v3747_v39, %v2923_v41  ;;  %v3051_v44 = vld [vmem:[#allocation9 + $0x330] sm:$0xf0]  ;;  %v3770_v37 = vld [vmem:[#allocation9 + $0x2d4] sm:$0xf0] }
  0x94   :  { %v3054_v45 = vor.u32 %v3779_v42, %v3051_v44  ;;  %v3137_v42 = vld [vmem:[#allocation9 + $0x3c8] sm:$0xf] }
  0x95   :  { %v2721_v44 = vld [vmem:[#allocation9 + $0x88] sm:$0xf] }
  0x96   :  { %1423 = vmatpush.bf16.msra.mxu0 %v2734_v49  ;;  %1436 = vmatpush.bf16.msra.mxu1 %v2862_v50  ;;  %v3775_v49 = vld [vmem:[#allocation9 + $0x304] sm:$0xf]  ;;  %v3035_v50 = vld [vmem:[#allocation9 + $0x310] sm:$0xf0] }
  0x97   :  { %1461 = vmatpush.bf16.msra.mxu3 %v3134_v40  ;;  %1449 = vmatpush.bf16.msra.mxu2 %v2990_v56  ;;  %v3038_v51 = vor.u32 %v3775_v49, %v3035_v50  ;;  %v4338_v56 = vstv %s2604_s5 }
  0x9a   :  { %1424 = vmatpush.bf16.msra.mxu0 %v2718_v34  ;;  %1437 = vmatpush.bf16.msra.mxu1 %v2846_v61  ;;  %v3710_v34 = vld [vmem:[#allocation9 + $0xf4] sm:$0xf0]  ;;  %v2897_v61 = vld [vmem:[#allocation9 + $0x1e8] sm:$0xf] }
  0x9b   :  { %1462 = vmatpush.bf16.msra.mxu3 %v3118_v1  ;;  %1450 = vmatpush.bf16.msra.mxu2 %v2974_v2  ;;  %v473_v1 = vperm.slane %v468_v53, 3  ;;  %v2770_v4 = vor.u32 %v3710_v34, %v2769_v60  ;;  %v2993_v53 = vld [vmem:[#allocation9 + $0x2a8] sm:$0xf]  ;;  %v3694_v60 = vld [vmem:[#allocation9 + $0x74] sm:$0xf0] }
  0x9c   :  { %v2833_v34 = vld [vmem:[#allocation9 + $0x168] sm:$0xf] }
  0x9e   :  { %1425 = vmatpush.bf16.msra.mxu0 %v2702_v5  ;;  %1438 = vmatpush.bf16.msra.mxu1 %v2830_v6  ;;  %v2898_v5 = vor.u32 %v3742_v62, %v2897_v61  ;;  %v2753_v6 = vld [vmem:[#allocation9 + $0xc8] sm:$0xf]  ;;  %v3726_v61 = vld [vmem:[#allocation9 + $0x174] sm:$0xf0] }
  0x9f   :  { %1463 = vmatpush.bf16.msra.mxu3 %v3102_v11  ;;  %1451 = vmatpush.bf16.msra.mxu2 %v2958_v17  ;;  %v3738_v11 = vld [vmem:[#allocation9 + $0x1d4] sm:$0xf0]  ;;  %v2754_v23 = vor.u32 %v3706_v9, %v2753_v6  ;;  %v2817_v9 = vld [vmem:[#allocation9 + $0x148] sm:$0xf] }
  0xa0   :  { %v2882_v20 = vor.u32 %v3738_v11, %v2881_v10  ;;  %v3690_v6 = vld [vmem:[#allocation9 + $0x54] sm:$0xf0] }
  0xa1   :  { %v3722_v10 = vld [vmem:[#allocation9 + $0x154] sm:$0xf0] }
  0xa2   :  { %1426 = vmatpush.bf16.msra.mxu0 %v2686_v12  ;;  %1439 = vmatpush.bf16.msra.mxu1 %v2814_v13 }
  0xa3   :  { %1464 = vmatpush.bf16.msra.mxu3 %v3086_v19  ;;  %1452 = vmatpush.bf16.msra.mxu2 %v2942_v22  ;;  %v3774_v19 = vld [vmem:[#allocation9 + $0x2f4] sm:$0xf0] }
  0xa4   :  { %v3734_v22 = vld [vmem:[#allocation9 + $0x1b4] sm:$0xf0]  ;;  %v3026_v30 = vor.u32 %v3774_v19, %v3025_v18  ;;  %v2818_v18 = vor.u32 %v3722_v10, %v2817_v9  ;;  %v2673_v19 = vld [vmem:[#allocation9 + $0x28] sm:$0xf]  ;;  %v2739_v9 = vld [vmem:[#allocation9 + $0xb8] sm:$0xf0] }
  0xa5   :  { %v2866_v41 = vor.u32 %v3734_v22, %v2865_v29  ;;  %v3786_v29 = vld [vmem:[#allocation9 + $0x354] sm:$0xf0]  ;;  %v3732_v10 = vld [vmem:[#allocation9 + $0x1ac] sm:$0xf] }
  0xa6   :  { %1427 = vmatpush.bf16.msra.mxu0 %v2670_v21  ;;  %1440 = vmatpush.bf16.msra.mxu1 %v2798_v25  ;;  %v3806_v21 = vld [vmem:[#allocation9 + $0x3f4] sm:$0xf0] }
  0xa7   :  { %1465 = vmatpush.bf16.msra.mxu3 %v3070_v31  ;;  %1453 = vmatpush.bf16.msra.mxu2 %v2926_v43  ;;  %v3702_v25 = vld [vmem:[#allocation9 + $0xb4] sm:$0xf0]  ;;  %v3154_v33 = vor.u32 %v3806_v21, %v3153_v27 }
  0xa8   :  { %v2738_v35 = vor.u32 %v3702_v25, %v2737_v24  ;;  %v3802_v43 = vld [vmem:[#allocation9 + $0x3d4] sm:$0xf0]  ;;  %v2945_v25 = vld [vmem:[#allocation9 + $0x248] sm:$0xf] }
  0xa9   :  { %v3686_v27 = vld [vmem:[#allocation9 + $0x34] sm:$0xf0] }
  0xaa   :  { %1428 = vmatpush.bf16.msra.mxu0 %v2654_v36  ;;  %1441 = vmatpush.bf16.msra.mxu1 %v2782_v38  ;;  %v3009_v36 = vld [vmem:[#allocation9 + $0x2c8] sm:$0xf]  ;;  %v2674_v22 = vor.u32 %v3686_v27, %v2673_v19  ;;  %v3696_v27 = vld [vmem:[#allocation9 + $0x8c] sm:$0xf] }
  0xab   :  { %1466 = vmatpush.bf16.msra.mxu3 %v3054_v45  ;;  %1454 = vmatpush.bf16.msra.mxu2 %v2910_v48  ;;  %v3698_v45 = vld [vmem:[#allocation9 + $0x94] sm:$0xf0]  ;;  %v3010_v50 = vor.u32 %v3770_v37, %v3009_v36  ;;  %v3708_v36 = vld [vmem:[#allocation9 + $0xec] sm:$0xf]  ;;  %v2771_v37 = vld [vmem:[#allocation9 + $0xf8] sm:$0xf0] }
  0xaf   :  { %1467 = vmatpush.bf16.msra.mxu3 %v3038_v51  ;;  %v3138_v51 = vor.u32 %v3802_v43, %v3137_v42  ;;  %v3740_v43 = vld [vmem:[#allocation9 + $0x1ec] sm:$0xf] }
 0x109   :  { %v531_v40 = vpop.f32.mrf.mxu0  ;;  %v544_v57 = vpop.f32.mrf.mxu1 }
 0x10a   :  { %v532_v58 = vadd.f32 %v531_v40, %v470_v54  ;;  %v545_v59 = vadd.f32 %v544_v57, %v471_v55  ;;  %v2722_v54 = vor.u32 %v3698_v45, %v2721_v44  ;;  %v2850_v55 = vor.u32 %v3730_v47, %v2849_v46  ;;  %v3766_v40 = vld [vmem:[#allocation9 + $0x2b4] sm:$0xf0]  ;;  %v3121_v57 = vld [vmem:[#allocation9 + $0x3a8] sm:$0xf]  ;;  %v2899_v44 = vld [vmem:[#allocation9 + $0x1f8] sm:$0xf0] }
 0x10b   :  { %v2994_v62 = vor.u32 %v3766_v40, %v2993_v53  ;;  %v2929_v45 = vld [vmem:[#allocation9 + $0x228] sm:$0xf]  ;;  %v3750_v46 = vld [vmem:[#allocation9 + $0x234] sm:$0xf0]  ;;  %v2902_v53 = vor.u32 %v3740_v43, %v2899_v44  ;;  %v3736_v40 = vld [vmem:[#allocation9 + $0x1cc] sm:$0xf] }
 0x10c   :  { %vm574_vm7 = vcmp.ge.f32.partialorder %v532_v58, 0.0  ;;  %v579_v63 = vmul.f32 %v4338_v56, %v532_v58  ;;  %vm575_vm8 = vcmp.ge.f32.partialorder %v545_v59, 0.0  ;;  %v580_v0 = vmul.f32 %v4338_v56, %v545_v59  ;;  %v3057_v47 = vld [vmem:[#allocation9 + $0x328] sm:$0xf]  ;;  %v2979_v43 = vld [vmem:[#allocation9 + $0x298] sm:$0xf0] }
 0x10d   :  { %v3792_v44 = vld [vmem:[#allocation9 + $0x38c] sm:$0xf] }
 0x10e   :  { %v583_v2 = vsel %vm574_vm7, %v532_v58, %v579_v63  ;;  %v584_v3 = vsel %vm575_vm8, %v545_v59, %v580_v0  ;;  %v3798_v58 = vld [vmem:[#allocation9 + $0x3b4] sm:$0xf0]  ;;  %v2705_v59 = vld [vmem:[#allocation9 + $0x68] sm:$0xf] }
 0x10f   :  { %v4342_v7 = vpack.c.bf16 %v583_v2, %v583_v2  ;;  %v4344_v8 = vpack.c.bf16 %v584_v3, %v584_v3  ;;  %v3122_v63 = vor.u32 %v3798_v58, %v3121_v57  ;;  %v2977_v0 = vld [vmem:[#allocation9 + $0x288] sm:$0xf]  ;;  %v3794_v2 = vld [vmem:[#allocation9 + $0x394] sm:$0xf0]  ;;  %v2706_v3 = vor.u32 %v3694_v60, %v2705_v59  ;;  %v2883_v59 = vld [vmem:[#allocation9 + $0x1d8] sm:$0xf0] }
 0x110   :  { %v557_v12 = vpop.f32.mrf.mxu2  ;;  %v570_v13 = vpop.f32.mrf.mxu3  ;;  %v2930_v57 = vor.u32 %v3750_v46, %v2929_v45  ;;  %v2913_v60 = vld [vmem:[#allocation9 + $0x208] sm:$0xf]  ;;  %v3107_v45 = vld [vmem:[#allocation9 + $0x398] sm:$0xf0] }
 0x111   :  { %v558_v14 = vadd.f32 %v557_v12, %v472_v52  ;;  %v571_v15 = vadd.f32 %v570_v13, %v473_v1  ;;  %v533_v16 = vpop.f32.mrf.mxu0  ;;  %1377 = vmatmul.bf16.vlgmr.msrb.gmra.mxu0 %v4342_v7  ;;  %1390 = vmatmul.bf16.vlgmr.msrb.gmra.mxu1 %v4344_v8  ;;  %v546_v17 = vpop.f32.mrf.mxu1  ;;  %v3762_v52 = vld [vmem:[#allocation9 + $0x294] sm:$0xf0]  ;;  %v3105_v1 = vld [vmem:[#allocation9 + $0x388] sm:$0xf] }
 0x112   :  { %1473 = vmatpush.bf16.msrb.mxu0 %v2770_v4  ;;  %1486 = vmatpush.bf16.msrb.mxu1 %v2898_v5  ;;  %v2834_v4 = vor.u32 %v3726_v61, %v2833_v34  ;;  %v2689_v5 = vld [vmem:[#allocation9 + $0x48] sm:$0xf]  ;;  %v2978_v11 = vor.u32 %v3762_v52, %v2977_v0  ;;  %v3106_v12 = vor.u32 %v3794_v2, %v3105_v1  ;;  %v3790_v16 = vld [vmem:[#allocation9 + $0x374] sm:$0xf0]  ;;  %v3027_v0 = vld [vmem:[#allocation9 + $0x2f8] sm:$0xf0] }
 0x113   :  { %vm576_vm9 = vcmp.ge.f32.partialorder %v558_v14, 0.0  ;;  %v581_v26 = vmul.f32 %v4338_v56, %v558_v14  ;;  %vm577_vm10 = vcmp.ge.f32.partialorder %v571_v15, 0.0  ;;  %v582_v28 = vmul.f32 %v4338_v56, %v571_v15  ;;  %v2961_v13 = vld [vmem:[#allocation9 + $0x268] sm:$0xf]  ;;  %v3746_v34 = vld [vmem:[#allocation9 + $0x214] sm:$0xf0] }
 0x114   :  { %v2690_v17 = vor.u32 %v3690_v6, %v2689_v5  ;;  %v3041_v61 = vld [vmem:[#allocation9 + $0x308] sm:$0xf]  ;;  %v3804_v52 = vld [vmem:[#allocation9 + $0x3ec] sm:$0xf]  ;;  %v3155_v1 = vld [vmem:[#allocation9 + $0x3f8] sm:$0xf0]  ;;  %v2914_v5 = vor.u32 %v3746_v34, %v2913_v60 }
 0x115   :  { %v585_v31 = vsel %vm576_vm9, %v558_v14, %v581_v26  ;;  %v586_v32 = vsel %vm577_vm10, %v571_v15, %v582_v28  ;;  %v3758_v14 = vld [vmem:[#allocation9 + $0x274] sm:$0xf0]  ;;  %v3089_v15 = vld [vmem:[#allocation9 + $0x368] sm:$0xf]  ;;  %v3684_v34 = vld [vmem:[#allocation9 + $0x2c] sm:$0xf] }
 0x116   :  { %v4350_v38 = vpack.c.bf16 %v585_v31, %v585_v31  ;;  %v4352_v39 = vpack.c.bf16 %v586_v32, %v586_v32  ;;  %1474 = vmatpush.bf16.msrb.mxu0 %v2754_v23  ;;  %1487 = vmatpush.bf16.msrb.mxu1 %v2882_v20  ;;  %v2801_v23 = vld [vmem:[#allocation9 + $0x128] sm:$0xf]  ;;  %v3718_v20 = vld [vmem:[#allocation9 + $0x134] sm:$0xf0]  ;;  %v2962_v21 = vor.u32 %v3758_v14, %v2961_v13  ;;  %v3768_v14 = vld [vmem:[#allocation9 + $0x2cc] sm:$0xf] }
 0x117   :  { %v3090_v24 = vor.u32 %v3790_v16, %v3089_v15  ;;  %v3754_v26 = vld [vmem:[#allocation9 + $0x254] sm:$0xf0]  ;;  %v3073_v28 = vld [vmem:[#allocation9 + $0x348] sm:$0xf]  ;;  %v3158_v13 = vor.u32 %v3804_v52, %v3155_v1  ;;  %v3011_v15 = vld [vmem:[#allocation9 + $0x2d8] sm:$0xf0] }
 0x118   :  { %v559_v48 = vpop.f32.mrf.mxu2  ;;  %v572_v49 = vpop.f32.mrf.mxu3  ;;  %1403 = vmatmul.bf16.vlgmr.msrb.gmra.mxu2 %v4350_v38  ;;  %1416 = vmatmul.bf16.vlgmr.msrb.gmra.mxu3 %v4352_v39  ;;  %v2657_v31 = vld [vmem:[#allocation9 + $0x8] sm:$0xf]  ;;  %v3682_v32 = vld [vmem:[#allocation9 + $0x14] sm:$0xf0]  ;;  %v3074_v42 = vor.u32 %v3786_v29, %v3073_v28  ;;  %v3800_v16 = vld [vmem:[#allocation9 + $0x3cc] sm:$0xf] }
 0x119   :  { %1499 = vmatpush.bf16.msrb.mxu2 %v3026_v30  ;;  %1512 = vmatpush.bf16.msrb.mxu3 %v3154_v33  ;;  %v2802_v30 = vor.u32 %v3718_v20, %v2801_v23  ;;  %v2785_v33 = vld [vmem:[#allocation9 + $0x108] sm:$0xf]  ;;  %v3782_v48 = vld [vmem:[#allocation9 + $0x334] sm:$0xf0]  ;;  %v2658_v49 = vor.u32 %v3682_v32, %v2657_v31  ;;  %v2723_v23 = vld [vmem:[#allocation9 + $0x98] sm:$0xf0] }
 0x11a   :  { %1475 = vmatpush.bf16.msrb.mxu0 %v2738_v35  ;;  %1488 = vmatpush.bf16.msrb.mxu1 %v2866_v41  ;;  %v3714_v35 = vld [vmem:[#allocation9 + $0x114] sm:$0xf0]  ;;  %v2946_v41 = vor.u32 %v3754_v26, %v2945_v25  ;;  %v3058_v58 = vor.u32 %v3782_v48, %v3057_v47  ;;  %v3728_v20 = vld [vmem:[#allocation9 + $0x18c] sm:$0xf]  ;;  %v2995_v28 = vld [vmem:[#allocation9 + $0x2b8] sm:$0xf0] }
 0x11b   :  { %v3764_v26 = vld [vmem:[#allocation9 + $0x2ac] sm:$0xf] }
 0x11c   :  { %v3796_v29 = vld [vmem:[#allocation9 + $0x3ac] sm:$0xf] }
 0x11d   :  { %1500 = vmatpush.bf16.msrb.mxu2 %v3010_v50  ;;  %1513 = vmatpush.bf16.msrb.mxu3 %v3138_v51  ;;  %v2786_v50 = vor.u32 %v3714_v35, %v2785_v33  ;;  %v2774_v51 = vor.u32 %v3708_v36, %v2771_v37  ;;  %v3692_v32 = vld [vmem:[#allocation9 + $0x6c] sm:$0xf]  ;;  %v2707_v33 = vld [vmem:[#allocation9 + $0x78] sm:$0xf0]  ;;  %v2998_v37 = vor.u32 %v3764_v26, %v2995_v28  ;;  %v3257_v28 = vld [vmem:[#allocation12 + $0xc0] sm:$0xf] }
 0x11e   :  { %1476 = vmatpush.bf16.msrb.mxu0 %v2722_v54  ;;  %1489 = vmatpush.bf16.msrb.mxu1 %v2850_v55  ;;  %v3704_v54 = vld [vmem:[#allocation9 + $0xcc] sm:$0xf]  ;;  %v2755_v55 = vld [vmem:[#allocation9 + $0xd8] sm:$0xf0]  ;;  %v2710_v46 = vor.u32 %v3692_v32, %v2707_v33  ;;  %v3385_v32 = vld [vmem:[#allocation12 + $0x1c0] sm:$0xf] }
 0x11f   :  { %v2758_v2 = vor.u32 %v3704_v54, %v2755_v55  ;;  %v3724_v35 = vld [vmem:[#allocation9 + $0x16c] sm:$0xf]  ;;  %v2835_v36 = vld [vmem:[#allocation9 + $0x178] sm:$0xf0]  ;;  %v3110_v54 = vor.u32 %v3792_v44, %v3107_v45  ;;  %v3865_v33 = vld [vmem:[#allocation12 + $0x1cc] sm:$0xf0] }
 0x120   :  { %v2838_v47 = vor.u32 %v3724_v35, %v2835_v36  ;;  %v3688_v48 = vld [vmem:[#allocation9 + $0x4c] sm:$0xf]  ;;  %v2915_v35 = vld [vmem:[#allocation9 + $0x218] sm:$0xf0]  ;;  %v3386_v44 = vor.u32 %v3865_v33, %v3385_v32  ;;  %v3289_v32 = vld [vmem:[#allocation12 + $0x100] sm:$0xf] }
 0x121   :  { %1501 = vmatpush.bf16.msrb.mxu2 %v2994_v62  ;;  %1514 = vmatpush.bf16.msrb.mxu3 %v3122_v63  ;;  %v3778_v62 = vld [vmem:[#allocation9 + $0x314] sm:$0xf0]  ;;  %v3772_v63 = vld [vmem:[#allocation9 + $0x2ec] sm:$0xf]  ;;  %v3841_v33 = vld [vmem:[#allocation12 + $0x10c] sm:$0xf0] }
 0x122   :  { %1429 = vmatmul.bf16.vlgmr.msra.gmra.mxu0 %v4342_v7  ;;  %1442 = vmatmul.bf16.vlgmr.msra.gmra.mxu1 %v4344_v8  ;;  %v3042_v6 = vor.u32 %v3778_v62, %v3041_v61  ;;  %v3756_v55 = vld [vmem:[#allocation9 + $0x26c] sm:$0xf]  ;;  %v2675_v61 = vld [vmem:[#allocation9 + $0x38] sm:$0xf0] }
 0x123   :  { %1477 = vmatpush.bf16.msrb.mxu0 %v2706_v3  ;;  %1490 = vmatpush.bf16.msrb.mxu1 %v2834_v4  ;;  %v2886_v3 = vor.u32 %v3736_v40, %v2883_v59  ;;  %v3700_v4 = vld [vmem:[#allocation9 + $0xac] sm:$0xf]  ;;  %v2963_v40 = vld [vmem:[#allocation9 + $0x278] sm:$0xf0] }
 0x124   :  { %v3716_v62 = vld [vmem:[#allocation9 + $0x12c] sm:$0xf] }
 0x125   :  { %1502 = vmatpush.bf16.msrb.mxu2 %v2978_v11  ;;  %1515 = vmatpush.bf16.msrb.mxu3 %v3106_v12  ;;  %v2867_v11 = vld [vmem:[#allocation9 + $0x1b8] sm:$0xf0]  ;;  %v3030_v12 = vor.u32 %v3772_v63, %v3027_v0  ;;  %v2966_v0 = vor.u32 %v3756_v55, %v2963_v40  ;;  %v3752_v1 = vld [vmem:[#allocation9 + $0x24c] sm:$0xf]  ;;  %v3825_v40 = vld [vmem:[#allocation12 + $0x8c] sm:$0xf0] }
 0x126   :  { %v2870_v19 = vor.u32 %v3732_v10, %v2867_v11  ;;  %v2803_v63 = vld [vmem:[#allocation9 + $0x138] sm:$0xf0]  ;;  %v3712_v11 = vld [vmem:[#allocation9 + $0x10c] sm:$0xf] }
 0x127   :  { %1478 = vmatpush.bf16.msrb.mxu0 %v2690_v17  ;;  %1491 = vmatpush.bf16.msrb.mxu1 %v2818_v18  ;;  %v3139_v17 = vld [vmem:[#allocation9 + $0x3d8] sm:$0xf0]  ;;  %v2742_v18 = vor.u32 %v3700_v4, %v2739_v9  ;;  %v3680_v9 = vld [vmem:[#allocation9 + $0xc] sm:$0xf] }
 0x128   :  { %1455 = vmatmul.bf16.vlgmr.msra.gmra.mxu2 %v4350_v38  ;;  %1468 = vmatmul.bf16.vlgmr.msra.gmra.mxu3 %v4352_v39  ;;  %v3142_v25 = vor.u32 %v3800_v16, %v3139_v17  ;;  %v3075_v4 = vld [vmem:[#allocation9 + $0x358] sm:$0xf0]  ;;  %v3837_v17 = vld [vmem:[#allocation12 + $0xec] sm:$0xf0]  ;;  %v3776_v36 = vld [vmem:[#allocation9 + $0x30c] sm:$0xf] }
 0x129   :  { %1503 = vmatpush.bf16.msrb.mxu2 %v2962_v21  ;;  %1516 = vmatpush.bf16.msrb.mxu3 %v3090_v24  ;;  %v2851_v21 = vld [vmem:[#allocation9 + $0x198] sm:$0xf0]  ;;  %v3014_v24 = vor.u32 %v3768_v14, %v3011_v15  ;;  %v3273_v14 = vld [vmem:[#allocation12 + $0xe0] sm:$0xf] }
 0x12a   :  { %v2854_v31 = vor.u32 %v3728_v20, %v2851_v21  ;;  %v2659_v10 = vld [vmem:[#allocation9 + $0x18] sm:$0xf0]  ;;  %v3274_v26 = vor.u32 %v3837_v17, %v3273_v14  ;;  %v3321_v14 = vld [vmem:[#allocation12 + $0x140] sm:$0xf] }
 0x12b   :  { %1479 = vmatpush.bf16.msrb.mxu0 %v2674_v22  ;;  %1492 = vmatpush.bf16.msrb.mxu1 %v2802_v30  ;;  %v3123_v22 = vld [vmem:[#allocation9 + $0x3b8] sm:$0xf0]  ;;  %v2726_v30 = vor.u32 %v3696_v27, %v2723_v23  ;;  %v3780_v23 = vld [vmem:[#allocation9 + $0x32c] sm:$0xf]  ;;  %v2662_v21 = vor.u32 %v3680_v9, %v2659_v10 }
 0x12c   :  { %v2931_v27 = vld [vmem:[#allocation9 + $0x238] sm:$0xf0] }
 0x12d   :  { %1504 = vmatpush.bf16.msrb.mxu2 %v2946_v41  ;;  %1517 = vmatpush.bf16.msrb.mxu3 %v3074_v42  ;;  %v3126_v41 = vor.u32 %v3796_v29, %v3123_v22  ;;  %v3760_v42 = vld [vmem:[#allocation9 + $0x28c] sm:$0xf]  ;;  %v3059_v20 = vld [vmem:[#allocation9 + $0x338] sm:$0xf0] }
 0x12f   :  { %1480 = vmatpush.bf16.msrb.mxu0 %v2658_v49  ;;  %1493 = vmatpush.bf16.msrb.mxu1 %v2786_v50  ;;  %v2691_v49 = vld [vmem:[#allocation9 + $0x58] sm:$0xf0]  ;;  %v3720_v50 = vld [vmem:[#allocation9 + $0x14c] sm:$0xf] }
 0x130   :  { %v2694_v59 = vor.u32 %v3688_v48, %v2691_v49  ;;  %v3829_v48 = vld [vmem:[#allocation12 + $0xac] sm:$0xf0]  ;;  %v3369_v49 = vld [vmem:[#allocation12 + $0x1a0] sm:$0xf] }
 0x131   :  { %1505 = vmatpush.bf16.msrb.mxu2 %v2930_v57  ;;  %1518 = vmatpush.bf16.msrb.mxu3 %v3058_v58  ;;  %v3788_v57 = vld [vmem:[#allocation9 + $0x36c] sm:$0xf]  ;;  %v3091_v58 = vld [vmem:[#allocation9 + $0x378] sm:$0xf0] }
 0x132   :  { %1481 = vmatmul.bf16.vlgmr.msrb.gmra.mxu0 %v4342_v7  ;;  %1494 = vmatmul.bf16.vlgmr.msrb.gmra.mxu1 %v4344_v8  ;;  %v3094_v52 = vor.u32 %v3788_v57, %v3091_v58  ;;  %v3353_v57 = vld [vmem:[#allocation12 + $0x180] sm:$0xf]  ;;  %v3857_v58 = vld [vmem:[#allocation12 + $0x18c] sm:$0xf0] }
 0x133   :  { %1525 = vmatpush.bf16.msra.mxu0 %v2774_v51  ;;  %1538 = vmatpush.bf16.msra.mxu1 %v2902_v53  ;;  %v2819_v51 = vld [vmem:[#allocation9 + $0x158] sm:$0xf0]  ;;  %v2982_v53 = vor.u32 %v3760_v42, %v2979_v43  ;;  %v3901_v42 = vld [vmem:[#allocation12 + $0x2ec] sm:$0xf0] }
 0x134   :  { %v2822_v60 = vor.u32 %v3720_v50, %v2819_v51  ;;  %v3861_v50 = vld [vmem:[#allocation12 + $0x1ac] sm:$0xf0] }
 0x135   :  { %1506 = vmatpush.bf16.msrb.mxu2 %v2914_v5  ;;  %1519 = vmatpush.bf16.msrb.mxu3 %v3042_v6  ;;  %v2678_v5 = vor.u32 %v3684_v34, %v2675_v61  ;;  %v2806_v6 = vor.u32 %v3716_v62, %v2803_v63  ;;  %v3370_v55 = vor.u32 %v3861_v50, %v3369_v49  ;;  %v3337_v34 = vld [vmem:[#allocation12 + $0x160] sm:$0xf]  ;;  %v3853_v61 = vld [vmem:[#allocation12 + $0x16c] sm:$0xf0] }
 0x136   :  { %v3338_v63 = vor.u32 %v3853_v61, %v3337_v34  ;;  %v3885_v49 = vld [vmem:[#allocation12 + $0x26c] sm:$0xf0]  ;;  %v3859_v34 = vld [vmem:[#allocation12 + $0x1a4] sm:$0xf] }
 0x137   :  { %1526 = vmatpush.bf16.msra.mxu0 %v2758_v2  ;;  %1539 = vmatpush.bf16.msra.mxu1 %v2886_v3  ;;  %v2947_v2 = vld [vmem:[#allocation9 + $0x258] sm:$0xf0]  ;;  %v3784_v3 = vld [vmem:[#allocation9 + $0x34c] sm:$0xf] }
 0x138   :  { %1507 = vmatmul.bf16.vlgmr.msrb.gmra.mxu2 %v4350_v38  ;;  %1520 = vmatmul.bf16.vlgmr.msrb.gmra.mxu3 %v4352_v39  ;;  %v2950_v15 = vor.u32 %v3752_v1, %v2947_v2  ;;  %v3078_v16 = vor.u32 %v3784_v3, %v3075_v4  ;;  %v3813_v2 = vld [vmem:[#allocation12 + $0x2c] sm:$0xf0]  ;;  %v3161_v3 = vld [vmem:[#allocation12] sm:$0xf] }
 0x139   :  { %1551 = vmatpush.bf16.msra.mxu2 %v3030_v12  ;;  %1564 = vmatpush.bf16.msra.mxu3 %v3158_v13  ;;  %v2787_v12 = vld [vmem:[#allocation9 + $0x118] sm:$0xf0]  ;;  %v3748_v13 = vld [vmem:[#allocation9 + $0x22c] sm:$0xf]  ;;  %v3809_v4 = vld [vmem:[#allocation12 + $0xc] sm:$0xf0] }
 0x13a   :  { %v2934_v22 = vor.u32 %v3748_v13, %v2931_v27  ;;  %v3162_v9 = vor.u32 %v3809_v4, %v3161_v3  ;;  %v3243_v27 = vld [vmem:[#allocation12 + $0xb0] sm:$0xf0] }
 0x13b   :  { %1527 = vmatpush.bf16.msra.mxu0 %v2742_v18  ;;  %1540 = vmatpush.bf16.msra.mxu1 %v2870_v19  ;;  %v3401_v18 = vld [vmem:[#allocation12 + $0x1e0] sm:$0xf]  ;;  %v3869_v19 = vld [vmem:[#allocation12 + $0x1ec] sm:$0xf0]  ;;  %v3355_v4 = vld [vmem:[#allocation12 + $0x190] sm:$0xf0] }
 0x13c   :  { %v3402_v29 = vor.u32 %v3869_v19, %v3401_v18  ;;  %v3897_v18 = vld [vmem:[#allocation12 + $0x2cc] sm:$0xf0]  ;;  %v3827_v19 = vld [vmem:[#allocation12 + $0xa4] sm:$0xf] }
 0x13d   :  { %1552 = vmatpush.bf16.msra.mxu2 %v3014_v24  ;;  %1565 = vmatpush.bf16.msra.mxu3 %v3142_v25  ;;  %v2790_v24 = vor.u32 %v3712_v11, %v2787_v12  ;;  %v3744_v25 = vld [vmem:[#allocation9 + $0x20c] sm:$0xf]  ;;  %v3831_v11 = vld [vmem:[#allocation12 + $0xc4] sm:$0xf]  ;;  %v3259_v12 = vld [vmem:[#allocation12 + $0xd0] sm:$0xf0] }
 0x13e   :  { %v2918_v45 = vor.u32 %v3744_v25, %v2915_v35  ;;  %v3262_v13 = vor.u32 %v3831_v11, %v3259_v12  ;;  %v3497_v25 = vld [vmem:[#allocation12 + $0x2a0] sm:$0xf]  ;;  %v3933_v12 = vld [vmem:[#allocation12 + $0x3ec] sm:$0xf0] }
 0x13f   :  { %1528 = vmatpush.bf16.msra.mxu0 %v2726_v30  ;;  %1541 = vmatpush.bf16.msra.mxu1 %v2854_v31  ;;  %v3062_v30 = vor.u32 %v3780_v23, %v3059_v20  ;;  %v3833_v31 = vld [vmem:[#allocation12 + $0xcc] sm:$0xf0]  ;;  %v3246_v20 = vor.u32 %v3827_v19, %v3243_v27  ;;  %v3481_v35 = vld [vmem:[#allocation12 + $0x280] sm:$0xf] }
 0x140   :  { %v3258_v43 = vor.u32 %v3833_v31, %v3257_v28  ;;  %v3893_v28 = vld [vmem:[#allocation12 + $0x2ac] sm:$0xf0]  ;;  %v3641_v27 = vld [vmem:[#allocation12 + $0x3c0] sm:$0xf] }
 0x141   :  { %1553 = vmatpush.bf16.msra.mxu2 %v2998_v37  ;;  %1566 = vmatpush.bf16.msra.mxu3 %v3126_v41  ;;  %v3043_v37 = vld [vmem:[#allocation9 + $0x318] sm:$0xf0]  ;;  %v3529_v41 = vld [vmem:[#allocation12 + $0x2e0] sm:$0xf] }
 0x142   :  { %v3530_v51 = vor.u32 %v3901_v42, %v3529_v41  ;;  %v3819_v41 = vld [vmem:[#allocation12 + $0x64] sm:$0xf]  ;;  %v3211_v42 = vld [vmem:[#allocation12 + $0x70] sm:$0xf0] }
 0x143   :  { %1529 = vmatpush.bf16.msra.mxu0 %v2710_v46  ;;  %1542 = vmatpush.bf16.msra.mxu1 %v2838_v47  ;;  %v3046_v46 = vor.u32 %v3776_v36, %v3043_v37  ;;  %v3241_v47 = vld [vmem:[#allocation12 + $0xa0] sm:$0xf]  ;;  %v3290_v36 = vor.u32 %v3841_v33, %v3289_v32  ;;  %v3889_v37 = vld [vmem:[#allocation12 + $0x28c] sm:$0xf0] }
 0x145   :  { %1554 = vmatpush.bf16.msra.mxu2 %v2982_v53  ;;  %1567 = vmatpush.bf16.msra.mxu3 %v3110_v54  ;;  %v3242_v53 = vor.u32 %v3829_v48, %v3241_v47  ;;  %v3225_v54 = vld [vmem:[#allocation12 + $0x80] sm:$0xf] }
 0x146   :  { %v3465_v48 = vld [vmem:[#allocation12 + $0x260] sm:$0xf] }
 0x147   :  { %1530 = vmatpush.bf16.msra.mxu0 %v2694_v59  ;;  %1543 = vmatpush.bf16.msra.mxu1 %v2822_v60  ;;  %v3354_v59 = vor.u32 %v3857_v58, %v3353_v57  ;;  %v3821_v60 = vld [vmem:[#allocation12 + $0x6c] sm:$0xf0]  ;;  %v3466_v50 = vor.u32 %v3885_v49, %v3465_v48  ;;  %v3449_v58 = vld [vmem:[#allocation12 + $0x240] sm:$0xf]  ;;  %v3839_v49 = vld [vmem:[#allocation12 + $0x104] sm:$0xf] }
 0x149   :  { %1555 = vmatpush.bf16.msra.mxu2 %v2966_v0  ;;  %1568 = vmatpush.bf16.msra.mxu3 %v3094_v52  ;;  %v3193_v0 = vld [vmem:[#allocation12 + $0x40] sm:$0xf]  ;;  %v3817_v52 = vld [vmem:[#allocation12 + $0x4c] sm:$0xf0] }
 0x14a   :  { %v3194_v1 = vor.u32 %v3817_v52, %v3193_v0  ;;  %v3433_v0 = vld [vmem:[#allocation12 + $0x220] sm:$0xf]  ;;  %v3877_v52 = vld [vmem:[#allocation12 + $0x22c] sm:$0xf0] }
 0x14b   :  { %1531 = vmatpush.bf16.msra.mxu0 %v2678_v5  ;;  %1544 = vmatpush.bf16.msra.mxu1 %v2806_v6  ;;  %v3835_v5 = vld [vmem:[#allocation12 + $0xe4] sm:$0xf]  ;;  %v3275_v6 = vld [vmem:[#allocation12 + $0xf0] sm:$0xf0] }
 0x14c   :  { %v3278_v10 = vor.u32 %v3835_v5, %v3275_v6  ;;  %v3417_v6 = vld [vmem:[#allocation12 + $0x200] sm:$0xf] }
 0x14d   :  { %1556 = vmatpush.bf16.msra.mxu2 %v2950_v15  ;;  %1569 = vmatpush.bf16.msra.mxu3 %v3078_v16  ;;  %v3849_v15 = vld [vmem:[#allocation12 + $0x14c] sm:$0xf0]  ;;  %v3513_v16 = vld [vmem:[#allocation12 + $0x2c0] sm:$0xf] }
 0x14e   :  { %v3322_v17 = vor.u32 %v3849_v15, %v3321_v14  ;;  %v3514_v23 = vor.u32 %v3897_v18, %v3513_v16  ;;  %v3339_v14 = vld [vmem:[#allocation12 + $0x170] sm:$0xf0] }
 0x14f   :  { %1532 = vmatpush.bf16.msra.mxu0 %v2662_v21  ;;  %1545 = vmatpush.bf16.msra.mxu1 %v2790_v24  ;;  %v3305_v21 = vld [vmem:[#allocation12 + $0x120] sm:$0xf]  ;;  %v3845_v24 = vld [vmem:[#allocation12 + $0x12c] sm:$0xf0]  ;;  %v3531_v18 = vld [vmem:[#allocation12 + $0x2f0] sm:$0xf0] }
 0x151   :  { %1557 = vmatpush.bf16.msra.mxu2 %v2934_v22  ;;  %1570 = vmatpush.bf16.msra.mxu3 %v3062_v30  ;;  %v3227_v22 = vld [vmem:[#allocation12 + $0x90] sm:$0xf0]  ;;  %v3498_v30 = vor.u32 %v3893_v28, %v3497_v25  ;;  %v3895_v25 = vld [vmem:[#allocation12 + $0x2c4] sm:$0xf] }
 0x152   :  { %1533 = vmatmul.bf16.vlgmr.msra.gmra.mxu0 %v4342_v7  ;;  %1546 = vmatmul.bf16.vlgmr.msra.gmra.mxu1 %v4344_v8  ;;  %v3226_v7 = vor.u32 %v3825_v40, %v3225_v54  ;;  %v3209_v8 = vld [vmem:[#allocation12 + $0x60] sm:$0xf]  ;;  %v3863_v54 = vld [vmem:[#allocation12 + $0x1c4] sm:$0xf]  ;;  %v3387_v40 = vld [vmem:[#allocation12 + $0x1d0] sm:$0xf0] }
 0x153   :  { %2371 = vmatpush.bf16.msrb.mxu0 %v3274_v26  ;;  %2384 = vmatpush.bf16.msrb.mxu1 %v3402_v29  ;;  %v3210_v62 = vor.u32 %v3821_v60, %v3209_v8  ;;  %v3306_v26 = vor.u32 %v3845_v24, %v3305_v21  ;;  %v3823_v29 = vld [vmem:[#allocation12 + $0x84] sm:$0xf]  ;;  %v3390_v57 = vor.u32 %v3863_v54, %v3387_v40  ;;  %v3179_v60 = vld [vmem:[#allocation12 + $0x30] sm:$0xf0]  ;;  %v3593_v40 = vld [vmem:[#allocation12 + $0x360] sm:$0xf] }
 0x154   :  { %v3230_v31 = vor.u32 %v3823_v29, %v3227_v22  ;;  %v3847_v21 = vld [vmem:[#allocation12 + $0x144] sm:$0xf]  ;;  %v3323_v24 = vld [vmem:[#allocation12 + $0x150] sm:$0xf0]  ;;  %v4368_v22 = vld [vmem:[#allocation11] sm:$0xf] }
 0x155   :  { %1558 = vmatpush.bf16.msra.mxu2 %v2918_v45  ;;  %1571 = vmatpush.bf16.msra.mxu3 %v3046_v46  ;;  %v3867_v45 = vld [vmem:[#allocation12 + $0x1e4] sm:$0xf]  ;;  %v3403_v46 = vld [vmem:[#allocation12 + $0x1f0] sm:$0xf0] }
 0x156   :  { %v3406_v47 = vor.u32 %v3867_v45, %v3403_v46  ;;  %v3515_v28 = vld [vmem:[#allocation12 + $0x2d0] sm:$0xf0]  ;;  %v721_v45 = vperm.slane %v4368_v22, 0  ;;  %v3609_v46 = vld [vmem:[#allocation12 + $0x380] sm:$0xf] }
 0x157   :  { %2372 = vmatpush.bf16.msrb.mxu0 %v3258_v43  ;;  %2385 = vmatpush.bf16.msrb.mxu1 %v3386_v44  ;;  %v3482_v43 = vor.u32 %v3889_v37, %v3481_v35  ;;  %v3214_v44 = vor.u32 %v3819_v41, %v3211_v42  ;;  %v3518_v29 = vor.u32 %v3895_v25, %v3515_v28  ;;  %v3307_v37 = vld [vmem:[#allocation12 + $0x130] sm:$0xf0]  ;;  %v3891_v41 = vld [vmem:[#allocation12 + $0x2a4] sm:$0xf] }
 0x158   :  { %1559 = vmatmul.bf16.vlgmr.msra.gmra.mxu2 %v4350_v38  ;;  %1572 = vmatmul.bf16.vlgmr.msra.gmra.mxu3 %v4352_v39  ;;  %v3177_v38 = vld [vmem:[#allocation12 + $0x20] sm:$0xf]  ;;  %v3483_v54 = vld [vmem:[#allocation12 + $0x290] sm:$0xf0]  ;;  %v3871_v25 = vld [vmem:[#allocation12 + $0x204] sm:$0xf] }
 0x159   :  { %2397 = vmatpush.bf16.msrb.mxu2 %v3530_v51  ;;  %v3178_v39 = vor.u32 %v3813_v2, %v3177_v38  ;;  %v3815_v51 = vld [vmem:[#allocation12 + $0x44] sm:$0xf]  ;;  %v3163_v2 = vld [vmem:[#allocation12 + $0x10] sm:$0xf0] }
 0x15a   :  { %v3807_v38 = vld [vmem:[#allocation12 + $0x4] sm:$0xf] }
 0x15b   :  { %2373 = vmatpush.bf16.msrb.mxu0 %v3242_v53  ;;  %2386 = vmatpush.bf16.msrb.mxu1 %v3370_v55  ;;  %v3195_v53 = vld [vmem:[#allocation12 + $0x50] sm:$0xf0]  ;;  %v3166_v3 = vor.u32 %v3807_v38, %v3163_v2  ;;  %v3931_v28 = vld [vmem:[#allocation12 + $0x3e4] sm:$0xf] }
 0x15c   :  { %v3198_v55 = vor.u32 %v3815_v51, %v3195_v53  ;;  %v3887_v51 = vld [vmem:[#allocation12 + $0x284] sm:$0xf]  ;;  %v3451_v38 = vld [vmem:[#allocation12 + $0x250] sm:$0xf0] }
 0x15d   :  { %2398 = vmatpush.bf16.msrb.mxu2 %v3514_v23  ;;  %v3929_v23 = vld [vmem:[#allocation12 + $0x3cc] sm:$0xf0] }
 0x15f   :  { %2374 = vmatpush.bf16.msrb.mxu0 %v3226_v7  ;;  %2387 = vmatpush.bf16.msrb.mxu1 %v3354_v59  ;;  %v3881_v7 = vld [vmem:[#allocation12 + $0x24c] sm:$0xf0]  ;;  %v3811_v59 = vld [vmem:[#allocation12 + $0x24] sm:$0xf] }
 0x160   :  { %v3450_v8 = vor.u32 %v3881_v7, %v3449_v58  ;;  %v3182_v61 = vor.u32 %v3811_v59, %v3179_v60  ;;  %v3883_v60 = vld [vmem:[#allocation12 + $0x264] sm:$0xf] }
 0x161   :  { %2399 = vmatpush.bf16.msrb.mxu2 %v3498_v30  ;;  %v3625_v30 = vld [vmem:[#allocation12 + $0x3a0] sm:$0xf] }
 0x163   :  { %2375 = vmatpush.bf16.msrb.mxu0 %v3210_v62  ;;  %2388 = vmatpush.bf16.msrb.mxu1 %v3338_v63  ;;  %v3371_v62 = vld [vmem:[#allocation12 + $0x1b0] sm:$0xf0] }
 0x164   :  { %v3374_v63 = vor.u32 %v3859_v34, %v3371_v62  ;;  %v3467_v34 = vld [vmem:[#allocation12 + $0x270] sm:$0xf0]  ;;  %v3577_v62 = vld [vmem:[#allocation12 + $0x340] sm:$0xf] }
 0x165   :  { %2400 = vmatpush.bf16.msrb.mxu2 %v3482_v43  ;;  %v3499_v43 = vld [vmem:[#allocation12 + $0x2b0] sm:$0xf0] }
 0x167   :  { %2376 = vmatpush.bf16.msrb.mxu0 %v3194_v1  ;;  %2389 = vmatpush.bf16.msrb.mxu1 %v3322_v17  ;;  %v3434_v1 = vor.u32 %v3877_v52, %v3433_v0  ;;  %v3899_v17 = vld [vmem:[#allocation12 + $0x2e4] sm:$0xf] }
 0x168   :  { %v3534_v19 = vor.u32 %v3899_v17, %v3531_v18 }
 0x169   :  { %2401 = vmatpush.bf16.msrb.mxu2 %v3466_v50  ;;  %v3291_v50 = vld [vmem:[#allocation12 + $0x110] sm:$0xf0] }
 0x16a   :  { %v3294_v53 = vor.u32 %v3839_v49, %v3291_v50 }
 0x16b   :  { %2377 = vmatpush.bf16.msrb.mxu0 %v3178_v39  ;;  %2390 = vmatpush.bf16.msrb.mxu1 %v3306_v26  ;;  %v3855_v39 = vld [vmem:[#allocation12 + $0x184] sm:$0xf]  ;;  %v3326_v26 = vor.u32 %v3847_v21, %v3323_v24 }
 0x16c   :  { %v3358_v5 = vor.u32 %v3855_v39, %v3355_v4 }
 0x16d   :  { %2402 = vmatpush.bf16.msrb.mxu2 %v3450_v8 }
 0x16f   :  { %2378 = vmatpush.bf16.msrb.mxu0 %v3162_v9  ;;  %2391 = vmatpush.bf16.msrb.mxu1 %v3290_v36  ;;  %v3873_v9 = vld [vmem:[#allocation12 + $0x20c] sm:$0xf0]  ;;  %v3843_v36 = vld [vmem:[#allocation12 + $0x124] sm:$0xf] }
 0x170   :  { %v3418_v11 = vor.u32 %v3873_v9, %v3417_v6  ;;  %v3310_v42 = vor.u32 %v3843_v36, %v3307_v37  ;;  %v3909_v6 = vld [vmem:[#allocation12 + $0x32c] sm:$0xf0]  ;;  %v3659_v36 = vld [vmem:[#allocation12 + $0x3f0] sm:$0xf0] }
 0x171   :  { %2403 = vmatpush.bf16.msrb.mxu2 %v3434_v1  ;;  %v3879_v1 = vld [vmem:[#allocation12 + $0x244] sm:$0xf]  ;;  %v3662_v37 = vor.u32 %v3931_v28, %v3659_v36  ;;  %v3862_v28 = vld [vmem:[#allocation12 + $0x1b4] sm:$0xf0]  ;;  %v3169_v36 = vld [vmem:[#allocation12 + $0x8] sm:$0xf] }
 0x173   :  { %2423 = vmatpush.bf16.msra.mxu0 %v3278_v10  ;;  %2436 = vmatpush.bf16.msra.mxu1 %v3406_v47  ;;  %v3657_v10 = vld [vmem:[#allocation12 + $0x3e0] sm:$0xf]  ;;  %v3921_v47 = vld [vmem:[#allocation12 + $0x38c] sm:$0xf0] }
 0x174   :  { %v3658_v15 = vor.u32 %v3933_v12, %v3657_v10  ;;  %v3610_v48 = vor.u32 %v3921_v47, %v3609_v46  ;;  %v3435_v12 = vld [vmem:[#allocation12 + $0x230] sm:$0xf0]  ;;  %v3830_v46 = vld [vmem:[#allocation12 + $0xb4] sm:$0xf0]  ;;  %v3927_v47 = vld [vmem:[#allocation12 + $0x3c4] sm:$0xf] }
 0x175   :  { %2404 = vmatpush.bf16.msrb.mxu2 %v3418_v11  ;;  %v3875_v11 = vld [vmem:[#allocation12 + $0x224] sm:$0xf] }
 0x176   :  { %2410 = vmatpush.bf16.msrb.mxu3 %v3658_v15  ;;  %v3281_v15 = vld [vmem:[#allocation12 + $0xe8] sm:$0xf]  ;;  %v3438_v17 = vor.u32 %v3875_v11, %v3435_v12 }
 0x177   :  { %2424 = vmatpush.bf16.msra.mxu0 %v3262_v13  ;;  %2437 = vmatpush.bf16.msra.mxu1 %v3390_v57  ;;  %v3851_v13 = vld [vmem:[#allocation12 + $0x164] sm:$0xf]  ;;  %v3917_v57 = vld [vmem:[#allocation12 + $0x36c] sm:$0xf0]  ;;  %v3393_v11 = vld [vmem:[#allocation12 + $0x1c8] sm:$0xf] }
 0x178   :  { %v3342_v16 = vor.u32 %v3851_v13, %v3339_v14  ;;  %v3594_v59 = vor.u32 %v3917_v57, %v3593_v40  ;;  %v3826_v40 = vld [vmem:[#allocation12 + $0x94] sm:$0xf0]  ;;  %v3923_v57 = vld [vmem:[#allocation12 + $0x3a4] sm:$0xf] }
 0x179   :  { %2449 = vmatpush.bf16.msra.mxu2 %v3534_v19  ;;  %v722_v19 = vperm.slane %v4368_v22, 1 }
 0x17b   :  { %2425 = vmatpush.bf16.msra.mxu0 %v3246_v20  ;;  %2438 = vmatpush.bf16.msra.mxu1 %v3374_v63  ;;  %v3642_v20 = vor.u32 %v3929_v23, %v3641_v27  ;;  %v3913_v63 = vld [vmem:[#allocation12 + $0x34c] sm:$0xf0]  ;;  %v3545_v27 = vld [vmem:[#allocation12 + $0x300] sm:$0xf] }
 0x17c   :  { %v3578_v52 = vor.u32 %v3913_v63, %v3577_v62  ;;  %v3905_v23 = vld [vmem:[#allocation12 + $0x30c] sm:$0xf0]  ;;  %v3409_v62 = vld [vmem:[#allocation12 + $0x1e8] sm:$0xf] }
 0x17d   :  { %2411 = vmatpush.bf16.msrb.mxu3 %v3642_v20  ;;  %2450 = vmatpush.bf16.msra.mxu2 %v3518_v29  ;;  %v3546_v24 = vor.u32 %v3905_v23, %v3545_v27  ;;  %v3185_v23 = vld [vmem:[#allocation12 + $0x28] sm:$0xf] }
 0x17f   :  { %2426 = vmatpush.bf16.msra.mxu0 %v3230_v31  ;;  %2439 = vmatpush.bf16.msra.mxu1 %v3358_v5  ;;  %v3925_v31 = vld [vmem:[#allocation12 + $0x3ac] sm:$0xf0]  ;;  %v3561_v5 = vld [vmem:[#allocation12 + $0x320] sm:$0xf] }
 0x180   :  { %v3626_v35 = vor.u32 %v3925_v31, %v3625_v30  ;;  %v3562_v10 = vor.u32 %v3909_v6, %v3561_v5 }
 0x182   :  { %2412 = vmatpush.bf16.msrb.mxu3 %v3626_v35 }
 0x183   :  { %2427 = vmatpush.bf16.msra.mxu0 %v3214_v44  ;;  %2440 = vmatpush.bf16.msra.mxu1 %v3342_v16  ;;  %v3502_v44 = vor.u32 %v3891_v41, %v3499_v43  ;;  %v3838_v16 = vld [vmem:[#allocation12 + $0xf4] sm:$0xf0]  ;;  %v3249_v43 = vld [vmem:[#allocation12 + $0xa8] sm:$0xf] }
 0x184   :  { %v3282_v21 = vor.u32 %v3838_v16, %v3281_v15  ;;  %v3866_v15 = vld [vmem:[#allocation12 + $0x1d4] sm:$0xf0]  ;;  %v3915_v16 = vld [vmem:[#allocation12 + $0x364] sm:$0xf] }
 0x185   :  { %2451 = vmatpush.bf16.msra.mxu2 %v3502_v44  ;;  %v3394_v27 = vor.u32 %v3866_v15, %v3393_v11  ;;  %v3251_v11 = vld [vmem:[#allocation12 + $0xb8] sm:$0xf0] }
 0x186   :  { %2413 = vmatpush.bf16.msrb.mxu3 %v3610_v48  ;;  %v3643_v48 = vld [vmem:[#allocation12 + $0x3d0] sm:$0xf0] }
 0x187   :  { %2428 = vmatpush.bf16.msra.mxu0 %v3198_v55  ;;  %2441 = vmatpush.bf16.msra.mxu1 %v3326_v26  ;;  %v3486_v55 = vor.u32 %v3887_v51, %v3483_v54  ;;  %v3419_v26 = vld [vmem:[#allocation12 + $0x210] sm:$0xf0]  ;;  %v3646_v49 = vor.u32 %v3927_v47, %v3643_v48  ;;  %v3250_v51 = vor.u32 %v3830_v46, %v3249_v43  ;;  %v3858_v43 = vld [vmem:[#allocation12 + $0x194] sm:$0xf0]  ;;  %v3836_v48 = vld [vmem:[#allocation12 + $0xec] sm:$0xf] }
 0x188   :  { %v3422_v35 = vor.u32 %v3871_v25, %v3419_v26 }
 0x189   :  { %2452 = vmatpush.bf16.msra.mxu2 %v3486_v55 }
 0x18a   :  { %2414 = vmatpush.bf16.msrb.mxu3 %v3594_v59 }
 0x18b   :  { %2429 = vmatpush.bf16.msra.mxu0 %v3182_v61  ;;  %2442 = vmatpush.bf16.msra.mxu1 %v3310_v42  ;;  %v3470_v61 = vor.u32 %v3883_v60, %v3467_v34  ;;  %v3217_v34 = vld [vmem:[#allocation12 + $0x68] sm:$0xf] }
 0x18d   :  { %2453 = vmatpush.bf16.msra.mxu2 %v3470_v61  ;;  %v3822_v61 = vld [vmem:[#allocation12 + $0x74] sm:$0xf0] }
 0x18e   :  { %v1378_v32 = vpop.f32.mrf.mxu0  ;;  %v1391_v33 = vpop.f32.mrf.mxu1  ;;  %2415 = vmatpush.bf16.msrb.mxu3 %v3578_v52  ;;  %v3870_v52 = vld [vmem:[#allocation12 + $0x1f4] sm:$0xf0]  ;;  %v3218_v5 = vor.u32 %v3822_v61, %v3217_v34  ;;  %v3832_v34 = vld [vmem:[#allocation12 + $0xcc] sm:$0xf]  ;;  %v3267_v61 = vld [vmem:[#allocation12 + $0xd8] sm:$0xf0] }
 0x18f   :  { %2430 = vmatpush.bf16.msra.mxu0 %v3166_v3  ;;  %v1379_v58 = vadd.f32 %v1378_v32, %v721_v45  ;;  %2443 = vmatpush.bf16.msra.mxu1 %v3294_v53  ;;  %v3454_v3 = vor.u32 %v3879_v1, %v3451_v38  ;;  %v3265_v32 = vld [vmem:[#allocation12 + $0xc8] sm:$0xf]  ;;  %v3919_v1 = vld [vmem:[#allocation12 + $0x384] sm:$0xf]  ;;  %v3611_v38 = vld [vmem:[#allocation12 + $0x390] sm:$0xf0]  ;;  %v3410_v6 = vor.u32 %v3870_v52, %v3409_v62 }
 0x190   :  { %v3233_v53 = vld [vmem:[#allocation12 + $0x88] sm:$0xf] }
 0x191   :  { %v1392_v0 = vadd.f32 %v1391_v33, %v1379_v58  ;;  %2454 = vmatpush.bf16.msra.mxu2 %v3454_v3  ;;  %v3834_v33 = vld [vmem:[#allocation12 + $0xd4] sm:$0xf0]  ;;  %v3627_v58 = vld [vmem:[#allocation12 + $0x3b0] sm:$0xf0]  ;;  %v3234_v60 = vor.u32 %v3826_v40, %v3233_v53  ;;  %v723_v3 = vperm.slane %v4368_v22, 2 }
 0x192   :  { %2416 = vmatpush.bf16.msrb.mxu3 %v3562_v10  ;;  %v3266_v42 = vor.u32 %v3834_v33, %v3265_v32  ;;  %v3818_v10 = vld [vmem:[#allocation12 + $0x54] sm:$0xf0] }
 0x193   :  { %v3854_v40 = vld [vmem:[#allocation12 + $0x174] sm:$0xf0] }
 0x195   :  { %2455 = vmatpush.bf16.msra.mxu2 %v3438_v17  ;;  %v3595_v17 = vld [vmem:[#allocation12 + $0x370] sm:$0xf0] }
 0x196   :  { %v1380_v7 = vpop.f32.mrf.mxu0  ;;  %v1393_v8 = vpop.f32.mrf.mxu1  ;;  %2417 = vmatpush.bf16.msrb.mxu3 %v3546_v24 }
 0x197   :  { %v3630_v8 = vor.u32 %v3923_v57, %v3627_v58 }
 0x199   :  { %2456 = vmatpush.bf16.msra.mxu2 %v3422_v35 }
 0x19a   :  { %2462 = vmatpush.bf16.msra.mxu3 %v3662_v37  ;;  %v3810_v37 = vld [vmem:[#allocation12 + $0x14] sm:$0xf0] }
 0x19b   :  { %v1404_v2 = vpop.f32.mrf.mxu2  ;;  %v1417_v39 = vpop.f32.mrf.mxu3  ;;  %v3170_v53 = vor.u32 %v3810_v37, %v3169_v36  ;;  %v3868_v36 = vld [vmem:[#allocation12 + $0x1ec] sm:$0xf]  ;;  %v3411_v37 = vld [vmem:[#allocation12 + $0x1f8] sm:$0xf0] }
 0x19c   :  { %v1405_v4 = vadd.f32 %v1404_v2, %v1392_v0 }
 0x19e   :  { %v1418_v9 = vadd.f32 %v1417_v39, %v1405_v4  ;;  %2463 = vmatpush.bf16.msra.mxu3 %v3646_v49  ;;  %v3614_v39 = vor.u32 %v3919_v1, %v3611_v38  ;;  %v3283_v49 = vld [vmem:[#allocation12 + $0xf8] sm:$0xf0]  ;;  %v3270_v38 = vor.u32 %v3832_v34, %v3267_v61 }
 0x19f   :  { %v1430_v13 = vpop.f32.mrf.mxu0  ;;  %v1443_v14 = vpop.f32.mrf.mxu1  ;;  %v3286_v58 = vor.u32 %v3836_v48, %v3283_v49  ;;  %v3816_v48 = vld [vmem:[#allocation12 + $0x4c] sm:$0xf]  ;;  %v3203_v49 = vld [vmem:[#allocation12 + $0x58] sm:$0xf0] }
 0x1a0   :  { %vm1577_vm11 = vcmp.ge.f32.partialorder %v1418_v9, 0.0  ;;  %v1581_v18 = vmul.f32 %v1418_v9, %v4338_v56  ;;  %v1431_v41 = vadd.f32 %v1430_v13, %v722_v19  ;;  %v3379_v34 = vld [vmem:[#allocation12 + $0x1b8] sm:$0xf0] }
 0x1a2   :  { %v1585_v20 = vsel %vm1577_vm11, %v1418_v9, %v1581_v18  ;;  %v1444_v50 = vadd.f32 %v1443_v14, %v1431_v41  ;;  %2464 = vmatpush.bf16.msra.mxu3 %v3630_v8  ;;  %v3201_v9 = vld [vmem:[#allocation12 + $0x48] sm:$0xf]  ;;  %v3598_v18 = vor.u32 %v3915_v16, %v3595_v17  ;;  %v3903_v8 = vld [vmem:[#allocation12 + $0x304] sm:$0xf]  ;;  %v3846_v17 = vld [vmem:[#allocation12 + $0x134] sm:$0xf0] }
 0x1a3   :  { %v4373_v29 = vpack.c.bf16 %v1585_v20, %v1585_v20  ;;  %v1406_v30 = vpop.f32.mrf.mxu2  ;;  %v1419_v31 = vpop.f32.mrf.mxu3  ;;  %v3202_v19 = vor.u32 %v3818_v10, %v3201_v9  ;;  %v3814_v20 = vld [vmem:[#allocation12 + $0x34] sm:$0xf0]  ;;  %v3361_v41 = vld [vmem:[#allocation12 + $0x188] sm:$0xf]  ;;  %v3828_v10 = vld [vmem:[#allocation12 + $0xac] sm:$0xf] }
 0x1a4   :  { %v3911_v30 = vld [vmem:[#allocation12 + $0x344] sm:$0xf]  ;;  %v3579_v31 = vld [vmem:[#allocation12 + $0x350] sm:$0xf0]  ;;  %v3186_v33 = vor.u32 %v3814_v20, %v3185_v23  ;;  %v3898_v9 = vld [vmem:[#allocation12 + $0x2d4] sm:$0xf0]  ;;  %v3254_v15 = vor.u32 %v3828_v10, %v3251_v11 }
 0x1a5   :  { %2379 = vmatmul.bf16.vlgmr.msrb.gmra.mxu0 %v4373_v29  ;;  %v3582_v32 = vor.u32 %v3911_v30, %v3579_v31  ;;  %v3313_v16 = vld [vmem:[#allocation12 + $0x128] sm:$0xf]  ;;  %v3235_v23 = vld [vmem:[#allocation12 + $0x98] sm:$0xf0] }
 0x1a6   :  { %2475 = vmatpush.bf16.msrb.mxu0 %v3282_v21  ;;  %2465 = vmatpush.bf16.msra.mxu3 %v3614_v39  ;;  %v3377_v21 = vld [vmem:[#allocation12 + $0x1a8] sm:$0xf]  ;;  %v3850_v39 = vld [vmem:[#allocation12 + $0x154] sm:$0xf0]  ;;  %v3314_v20 = vor.u32 %v3846_v17, %v3313_v16 }
 0x1a7   :  { %v1432_v44 = vpop.f32.mrf.mxu0  ;;  %v1445_v45 = vpop.f32.mrf.mxu1  ;;  %v3378_v35 = vor.u32 %v3862_v28, %v3377_v21  ;;  %v3489_v28 = vld [vmem:[#allocation12 + $0x288] sm:$0xf] }
 0x1a8   :  { %v3907_v44 = vld [vmem:[#allocation12 + $0x324] sm:$0xf]  ;;  %v3563_v45 = vld [vmem:[#allocation12 + $0x330] sm:$0xf0]  ;;  %v3665_v16 = vld [vmem:[#allocation12 + $0x3e8] sm:$0xf] }
 0x1aa   :  { %2476 = vmatpush.bf16.msrb.mxu0 %v3266_v42  ;;  %2466 = vmatpush.bf16.msra.mxu3 %v3598_v18  ;;  %v3505_v18 = vld [vmem:[#allocation12 + $0x2a8] sm:$0xf] }
 0x1ab   :  { %v1456_v54 = vpop.f32.mrf.mxu2  ;;  %v1469_v55 = vpop.f32.mrf.mxu3 }
 0x1ac   :  { %v1457_v7 = vadd.f32 %v1456_v54, %v1444_v50  ;;  %v3566_v50 = vor.u32 %v3907_v44, %v3563_v45  ;;  %v3362_v54 = vor.u32 %v3858_v43, %v3361_v41  ;;  %v3473_v45 = vld [vmem:[#allocation12 + $0x268] sm:$0xf] }
 0x1ae   :  { %v1470_v59 = vadd.f32 %v1469_v55, %v1457_v7  ;;  %2477 = vmatpush.bf16.msrb.mxu0 %v3250_v51  ;;  %2467 = vmatpush.bf16.msra.mxu3 %v3582_v32  ;;  %v3345_v55 = vld [vmem:[#allocation12 + $0x168] sm:$0xf]  ;;  %v3890_v32 = vld [vmem:[#allocation12 + $0x294] sm:$0xf0] }
 0x1af   :  { %v1482_v63 = vpop.f32.mrf.mxu0  ;;  %v1495_v0 = vpop.f32.mrf.mxu1  ;;  %v3537_v7 = vld [vmem:[#allocation12 + $0x2e8] sm:$0xf]  ;;  %v3490_v43 = vor.u32 %v3890_v32, %v3489_v28 }
 0x1b0   :  { %vm1578_vm12 = vcmp.ge.f32.partialorder %v1470_v59, 0.0  ;;  %v1582_v2 = vmul.f32 %v1470_v59, %v4338_v56  ;;  %v1483_v24 = vadd.f32 %v1482_v63, %v723_v3  ;;  %v3521_v3 = vld [vmem:[#allocation12 + $0x2c8] sm:$0xf] }
 0x1b2   :  { %v1586_v4 = vsel %vm1578_vm12, %v1470_v59, %v1582_v2  ;;  %2478 = vmatpush.bf16.msrb.mxu0 %v3234_v60  ;;  %v1496_v42 = vadd.f32 %v1495_v0, %v1483_v24  ;;  %2468 = vmatpush.bf16.msra.mxu3 %v3566_v50  ;;  %v3547_v59 = vld [vmem:[#allocation12 + $0x310] sm:$0xf0]  ;;  %v3902_v60 = vld [vmem:[#allocation12 + $0x2f4] sm:$0xf0]  ;;  %v3346_v0 = vor.u32 %v3854_v40, %v3345_v55  ;;  %v3329_v2 = vld [vmem:[#allocation12 + $0x148] sm:$0xf] }
 0x1b3   :  { %v4378_v12 = vpack.c.bf16 %v1586_v4, %v1586_v4  ;;  %v1458_v13 = vpop.f32.mrf.mxu2  ;;  %v1471_v14 = vpop.f32.mrf.mxu3  ;;  %v3550_v62 = vor.u32 %v3903_v8, %v3547_v59  ;;  %v3538_v1 = vor.u32 %v3902_v60, %v3537_v7  ;;  %v3864_v50 = vld [vmem:[#allocation12 + $0x1cc] sm:$0xf]  ;;  %v3206_v55 = vor.u32 %v3816_v48, %v3203_v49  ;;  %v3457_v40 = vld [vmem:[#allocation12 + $0x248] sm:$0xf]  ;;  %v3882_v7 = vld [vmem:[#allocation12 + $0x254] sm:$0xf0] }
 0x1b4   :  { %v3330_v13 = vor.u32 %v3850_v39, %v3329_v2  ;;  %v3522_v14 = vor.u32 %v3898_v9, %v3521_v3  ;;  %v3812_v8 = vld [vmem:[#allocation12 + $0x2c] sm:$0xf]  ;;  %v3187_v59 = vld [vmem:[#allocation12 + $0x38] sm:$0xf0]  ;;  %v3878_v2 = vld [vmem:[#allocation12 + $0x234] sm:$0xf0] }
 0x1b5   :  { %2392 = vmatmul.bf16.vlgmr.msrb.gmra.mxu1 %v4378_v12  ;;  %2431 = vmatmul.bf16.vlgmr.msra.gmra.mxu0 %v4373_v29  ;;  %v3860_v60 = vld [vmem:[#allocation12 + $0x1ac] sm:$0xf]  ;;  %v3171_v3 = vld [vmem:[#allocation12 + $0x18] sm:$0xf0] }
 0x1b6   :  { %2479 = vmatpush.bf16.msrb.mxu0 %v3218_v5  ;;  %2488 = vmatpush.bf16.msrb.mxu1 %v3410_v6  ;;  %v3808_v39 = vld [vmem:[#allocation12 + $0xc] sm:$0xf]  ;;  %v3363_v9 = vld [vmem:[#allocation12 + $0x198] sm:$0xf0] }
 0x1b7   :  { %v1484_v25 = vpop.f32.mrf.mxu0  ;;  %v1497_v26 = vpop.f32.mrf.mxu1  ;;  %2469 = vmatpush.bf16.msra.mxu3 %v3550_v62  ;;  %v3458_v62 = vor.u32 %v3882_v7, %v3457_v40  ;;  %v3844_v48 = vld [vmem:[#allocation12 + $0x12c] sm:$0xf]  ;;  %v3315_v49 = vld [vmem:[#allocation12 + $0x138] sm:$0xf0]  ;;  %v3922_v40 = vld [vmem:[#allocation12 + $0x394] sm:$0xf0] }
 0x1b8   :  { %v3297_v25 = vld [vmem:[#allocation12 + $0x108] sm:$0xf]  ;;  %v3842_v26 = vld [vmem:[#allocation12 + $0x114] sm:$0xf0]  ;;  %v3491_v7 = vld [vmem:[#allocation12 + $0x298] sm:$0xf0] }
 0x1b9   :  { %v3298_v41 = vor.u32 %v3842_v26, %v3297_v25 }
 0x1ba   :  { %2480 = vmatpush.bf16.msrb.mxu0 %v3202_v19  ;;  %2489 = vmatpush.bf16.msrb.mxu1 %v3394_v27  ;;  %v3894_v19 = vld [vmem:[#allocation12 + $0x2b4] sm:$0xf0]  ;;  %v3824_v27 = vld [vmem:[#allocation12 + $0x8c] sm:$0xf] }
 0x1bb   :  { %v1508_v46 = vpop.f32.mrf.mxu2  ;;  %v1521_v47 = vpop.f32.mrf.mxu3  ;;  %v3506_v21 = vor.u32 %v3894_v19, %v3505_v18  ;;  %v3238_v24 = vor.u32 %v3824_v27, %v3235_v23  ;;  %v3934_v18 = vld [vmem:[#allocation12 + $0x3f4] sm:$0xf0]  ;;  %v3852_v19 = vld [vmem:[#allocation12 + $0x16c] sm:$0xf]  ;;  %v3347_v27 = vld [vmem:[#allocation12 + $0x178] sm:$0xf0] }
 0x1bc   :  { %v1509_v51 = vadd.f32 %v1508_v46, %v1496_v42  ;;  %v724_v42 = vperm.slane %v4368_v22, 3  ;;  %v3414_v46 = vor.u32 %v3868_v36, %v3411_v37  ;;  %v3666_v26 = vor.u32 %v3934_v18, %v3665_v16  ;;  %v3930_v36 = vld [vmem:[#allocation12 + $0x3d4] sm:$0xf0]  ;;  %v3848_v37 = vld [vmem:[#allocation12 + $0x14c] sm:$0xf] }
 0x1bd   :  { %v3350_v32 = vor.u32 %v3852_v19, %v3347_v27  ;;  %v3906_v16 = vld [vmem:[#allocation12 + $0x314] sm:$0xf0]  ;;  %v3427_v18 = vld [vmem:[#allocation12 + $0x218] sm:$0xf0]  ;;  %v3932_v19 = vld [vmem:[#allocation12 + $0x3ec] sm:$0xf] }
 0x1be   :  { %2481 = vmatpush.bf16.msrb.mxu0 %v3186_v33  ;;  %2490 = vmatpush.bf16.msrb.mxu1 %v3378_v35  ;;  %v1522_v57 = vadd.f32 %v1521_v47, %v1509_v51  ;;  %v3820_v33 = vld [vmem:[#allocation12 + $0x6c] sm:$0xf]  ;;  %v3219_v35 = vld [vmem:[#allocation12 + $0x78] sm:$0xf0]  ;;  %v3886_v47 = vld [vmem:[#allocation12 + $0x274] sm:$0xf0] }
 0x1bf   :  { %v3222_v44 = vor.u32 %v3820_v33, %v3219_v35  ;;  %v3395_v51 = vld [vmem:[#allocation12 + $0x1d8] sm:$0xf0]  ;;  %v3649_v35 = vld [vmem:[#allocation12 + $0x3c8] sm:$0xf] }
 0x1c0   :  { %vm1579_vm13 = vcmp.ge.f32.partialorder %v1522_v57, 0.0  ;;  %v1583_v63 = vmul.f32 %v1522_v57, %v4338_v56  ;;  %v3667_v27 = vld [vmem:[#allocation12 + $0x3f8] sm:$0xf0] }
 0x1c2   :  { %2482 = vmatpush.bf16.msrb.mxu0 %v3170_v53  ;;  %2491 = vmatpush.bf16.msrb.mxu1 %v3362_v54  ;;  %v1587_v52 = vsel %vm1579_vm13, %v1522_v57, %v1583_v63  ;;  %v3474_v54 = vor.u32 %v3886_v47, %v3473_v45  ;;  %v3190_v63 = vor.u32 %v3812_v8, %v3187_v59  ;;  %v3926_v47 = vld [vmem:[#allocation12 + $0x3b4] sm:$0xf0] }
 0x1c3   :  { %v4383_v4 = vpack.c.bf16 %v1587_v52, %v1587_v52  ;;  %v1510_v5 = vpop.f32.mrf.mxu2  ;;  %v1523_v6 = vpop.f32.mrf.mxu3 }
 0x1c4   :  { %v3856_v6 = vld [vmem:[#allocation12 + $0x18c] sm:$0xf] }
 0x1c5   :  { %2444 = vmatmul.bf16.vlgmr.msra.gmra.mxu1 %v4378_v12  ;;  %2483 = vmatmul.bf16.vlgmr.msrb.gmra.mxu0 %v4373_v29  ;;  %v3366_v17 = vor.u32 %v3856_v6, %v3363_v9  ;;  %v3569_v6 = vld [vmem:[#allocation12 + $0x328] sm:$0xf]  ;;  %v3910_v9 = vld [vmem:[#allocation12 + $0x334] sm:$0xf0] }
 0x1c6   :  { %2527 = vmatpush.bf16.msra.mxu0 %v3286_v58  ;;  %2405 = vmatmul.bf16.vlgmr.msrb.gmra.mxu2 %v4383_v4  ;;  %v3398_v58 = vor.u32 %v3864_v50, %v3395_v51  ;;  %v3892_v50 = vld [vmem:[#allocation12 + $0x2ac] sm:$0xf]  ;;  %v3507_v51 = vld [vmem:[#allocation12 + $0x2b8] sm:$0xf0] }
 0x1c7   :  { %2492 = vmatpush.bf16.msrb.mxu1 %v3346_v0  ;;  %2501 = vmatpush.bf16.msrb.mxu2 %v3538_v1  ;;  %v3441_v0 = vld [vmem:[#allocation12 + $0x228] sm:$0xf] }
 0x1c8   :  { %v3442_v11 = vor.u32 %v3878_v2, %v3441_v0  ;;  %v3880_v2 = vld [vmem:[#allocation12 + $0x24c] sm:$0xf] }
 0x1ca   :  { %2528 = vmatpush.bf16.msra.mxu0 %v3270_v38  ;;  %v3382_v38 = vor.u32 %v3860_v60, %v3379_v34  ;;  %v3601_v34 = vld [vmem:[#allocation12 + $0x368] sm:$0xf] }
 0x1cb   :  { %2493 = vmatpush.bf16.msrb.mxu1 %v3330_v13  ;;  %2502 = vmatpush.bf16.msrb.mxu2 %v3522_v14  ;;  %v3174_v13 = vor.u32 %v3808_v39, %v3171_v3  ;;  %v3425_v14 = vld [vmem:[#allocation12 + $0x208] sm:$0xf]  ;;  %v3459_v39 = vld [vmem:[#allocation12 + $0x258] sm:$0xf0] }
 0x1ce   :  { %2529 = vmatpush.bf16.msra.mxu0 %v3254_v15  ;;  %v3874_v15 = vld [vmem:[#allocation12 + $0x214] sm:$0xf0] }
 0x1cf   :  { %v1534_v30 = vpop.f32.mrf.mxu0  ;;  %v1547_v31 = vpop.f32.mrf.mxu1  ;;  %2494 = vmatpush.bf16.msrb.mxu1 %v3314_v20  ;;  %2503 = vmatpush.bf16.msrb.mxu2 %v3506_v21  ;;  %v3900_v20 = vld [vmem:[#allocation12 + $0x2ec] sm:$0xf]  ;;  %v3539_v21 = vld [vmem:[#allocation12 + $0x2f8] sm:$0xf0]  ;;  %v3426_v25 = vor.u32 %v3874_v15, %v3425_v14  ;;  %v3553_v15 = vld [vmem:[#allocation12 + $0x308] sm:$0xf] }
 0x1d0   :  { %v1535_v53 = vadd.f32 %v1534_v30, %v724_v42  ;;  %v3542_v33 = vor.u32 %v3900_v20, %v3539_v21  ;;  %v3896_v42 = vld [vmem:[#allocation12 + $0x2cc] sm:$0xf]  ;;  %v3670_v20 = vor.u32 %v3932_v19, %v3667_v27 }
 0x1d1   :  { %v3928_v21 = vld [vmem:[#allocation12 + $0x3cc] sm:$0xf] }
 0x1d2   :  { %2530 = vmatpush.bf16.msra.mxu0 %v3238_v24  ;;  %v1548_v61 = vadd.f32 %v1547_v31, %v1535_v53 }
 0x1d3   :  { %2495 = vmatpush.bf16.msrb.mxu1 %v3298_v41  ;;  %2504 = vmatpush.bf16.msrb.mxu2 %v3490_v43  ;;  %v3331_v41 = vld [vmem:[#allocation12 + $0x158] sm:$0xf0]  ;;  %v3650_v43 = vor.u32 %v3930_v36, %v3649_v35  ;;  %v3916_v36 = vld [vmem:[#allocation12 + $0x36c] sm:$0xf] }
 0x1d6   :  { %2531 = vmatpush.bf16.msra.mxu0 %v3222_v44  ;;  %2496 = vmatmul.bf16.vlgmr.msrb.gmra.mxu1 %v4378_v12  ;;  %v3334_v44 = vor.u32 %v3848_v37, %v3331_v41  ;;  %v3603_v37 = vld [vmem:[#allocation12 + $0x378] sm:$0xf0] }
 0x1d7   :  { %2540 = vmatpush.bf16.msra.mxu1 %v3414_v46  ;;  %v1536_v22 = vpop.f32.mrf.mxu0  ;;  %v1549_v57 = vpop.f32.mrf.mxu1  ;;  %2457 = vmatmul.bf16.vlgmr.msra.gmra.mxu2 %v4383_v4  ;;  %v3633_v46 = vld [vmem:[#allocation12 + $0x3a8] sm:$0xf]  ;;  %v3606_v41 = vor.u32 %v3916_v36, %v3603_v37 }
 0x1d8   :  { %2505 = vmatpush.bf16.msrb.mxu2 %v3474_v54  ;;  %v3634_v53 = vor.u32 %v3926_v47, %v3633_v46  ;;  %v3510_v54 = vor.u32 %v3892_v50, %v3507_v51  ;;  %v3840_v22 = vld [vmem:[#allocation12 + $0x10c] sm:$0xf]  ;;  %v3299_v57 = vld [vmem:[#allocation12 + $0x118] sm:$0xf0] }
 0x1d9   :  { %v3302_v59 = vor.u32 %v3840_v22, %v3299_v57  ;;  %v3904_v47 = vld [vmem:[#allocation12 + $0x30c] sm:$0xf] }
 0x1da   :  { %2532 = vmatpush.bf16.msra.mxu0 %v3206_v55  ;;  %v3617_v55 = vld [vmem:[#allocation12 + $0x388] sm:$0xf] }
 0x1db   :  { %2541 = vmatpush.bf16.msra.mxu1 %v3398_v58  ;;  %v1560_v52 = vpop.f32.mrf.mxu2  ;;  %v1573_v1 = vpop.f32.mrf.mxu3  ;;  %v3888_v58 = vld [vmem:[#allocation12 + $0x28c] sm:$0xf]  ;;  %v3618_v8 = vor.u32 %v3922_v40, %v3617_v55 }
 0x1dc   :  { %v1561_v5 = vadd.f32 %v1560_v52, %v1548_v61  ;;  %2506 = vmatpush.bf16.msrb.mxu2 %v3458_v62  ;;  %v3494_v60 = vor.u32 %v3888_v58, %v3491_v7  ;;  %v3918_v61 = vld [vmem:[#allocation12 + $0x374] sm:$0xf0]  ;;  %v3884_v62 = vld [vmem:[#allocation12 + $0x26c] sm:$0xf] }
 0x1dd   :  { %v3602_v0 = vor.u32 %v3918_v61, %v3601_v34 }
 0x1de   :  { %v1574_v10 = vadd.f32 %v1573_v1, %v1561_v5  ;;  %2533 = vmatpush.bf16.msra.mxu0 %v3190_v63  ;;  %v3475_v63 = vld [vmem:[#allocation12 + $0x278] sm:$0xf0]  ;;  %v3585_v1 = vld [vmem:[#allocation12 + $0x348] sm:$0xf]  ;;  %v3462_v5 = vor.u32 %v3880_v2, %v3459_v39 }
 0x1df   :  { %2542 = vmatpush.bf16.msra.mxu1 %v3382_v38  ;;  %v3478_v52 = vor.u32 %v3884_v62, %v3475_v63  ;;  %v3914_v38 = vld [vmem:[#allocation12 + $0x354] sm:$0xf0] }
 0x1e0   :  { %vm1580_vm14 = vcmp.ge.f32.partialorder %v1574_v10, 0.0  ;;  %v1584_v23 = vmul.f32 %v1574_v10, %v4338_v56  ;;  %2507 = vmatpush.bf16.msrb.mxu2 %v3442_v11  ;;  %v3523_v56 = vld [vmem:[#allocation12 + $0x2d8] sm:$0xf0]  ;;  %v3586_v3 = vor.u32 %v3914_v38, %v3585_v1 }
 0x1e1   :  { %v3526_v45 = vor.u32 %v3896_v42, %v3523_v56  ;;  %v3443_v11 = vld [vmem:[#allocation12 + $0x238] sm:$0xf0]  ;;  %v3912_v42 = vld [vmem:[#allocation12 + $0x34c] sm:$0xf] }
 0x1e2   :  { %v1588_v24 = vsel %vm1580_vm14, %v1574_v10, %v1584_v23  ;;  %2534 = vmatpush.bf16.msra.mxu0 %v3174_v13  ;;  %v3876_v10 = vld [vmem:[#allocation12 + $0x22c] sm:$0xf]  ;;  %v3570_v13 = vor.u32 %v3910_v9, %v3569_v6  ;;  %v3554_v23 = vor.u32 %v3906_v16, %v3553_v15  ;;  %v3587_v56 = vld [vmem:[#allocation12 + $0x358] sm:$0xf0] }
 0x1e3   :  { %v4392_v28 = vpack.c.bf16 %v1588_v24, %v1588_v24  ;;  %2543 = vmatpush.bf16.msra.mxu1 %v3366_v17  ;;  %v1562_v30 = vpop.f32.mrf.mxu2  ;;  %v1575_v31 = vpop.f32.mrf.mxu3  ;;  %v3446_v14 = vor.u32 %v3876_v10, %v3443_v11  ;;  %v3872_v17 = vld [vmem:[#allocation12 + $0x20c] sm:$0xf]  ;;  %v3651_v24 = vld [vmem:[#allocation12 + $0x3d8] sm:$0xf0] }
 0x1e4   :  { %2508 = vmatpush.bf16.msrb.mxu2 %v3426_v25  ;;  %v3654_v25 = vor.u32 %v3928_v21, %v3651_v24  ;;  %v3635_v30 = vld [vmem:[#allocation12 + $0x3b8] sm:$0xf0] }
 0x1e5   :  { %2418 = vmatmul.bf16.vlgmr.msrb.gmra.mxu3 %v4392_v28  ;;  %2535 = vmatmul.bf16.vlgmr.msra.gmra.mxu0 %v4373_v29  ;;  %v3318_v29 = vor.u32 %v3844_v48, %v3315_v49 }
 0x1e6   :  { %2514 = vmatpush.bf16.msrb.mxu3 %v3666_v26  ;;  %v3924_v26 = vld [vmem:[#allocation12 + $0x3ac] sm:$0xf] }
 0x1e7   :  { %2544 = vmatpush.bf16.msra.mxu1 %v3350_v32  ;;  %2509 = vmatmul.bf16.vlgmr.msrb.gmra.mxu2 %v4383_v4  ;;  %v3638_v31 = vor.u32 %v3924_v26, %v3635_v30  ;;  %v3920_v32 = vld [vmem:[#allocation12 + $0x38c] sm:$0xf] }
 0x1e8   :  { %2553 = vmatpush.bf16.msra.mxu2 %v3542_v33  ;;  %v3619_v33 = vld [vmem:[#allocation12 + $0x398] sm:$0xf0] }
 0x1e9   :  { %v3622_v35 = vor.u32 %v3920_v32, %v3619_v33 }
 0x1ea   :  { %2515 = vmatpush.bf16.msrb.mxu3 %v3650_v43  ;;  %v3590_v43 = vor.u32 %v3912_v42, %v3587_v56 }
 0x1eb   :  { %2545 = vmatpush.bf16.msra.mxu1 %v3334_v44  ;;  %v3908_v44 = vld [vmem:[#allocation12 + $0x32c] sm:$0xf] }
 0x1ec   :  { %2554 = vmatpush.bf16.msra.mxu2 %v3526_v45  ;;  %v3571_v45 = vld [vmem:[#allocation12 + $0x338] sm:$0xf0] }
 0x1ed   :  { %v3574_v46 = vor.u32 %v3908_v44, %v3571_v45 }
 0x1ee   :  { %2516 = vmatpush.bf16.msrb.mxu3 %v3634_v53 }
 0x1ef   :  { %2546 = vmatpush.bf16.msra.mxu1 %v3318_v29 }
 0x1f0   :  { %2555 = vmatpush.bf16.msra.mxu2 %v3510_v54 }
 0x1f2   :  { %2517 = vmatpush.bf16.msrb.mxu3 %v3618_v8 }
 0x1f3   :  { %2547 = vmatpush.bf16.msra.mxu1 %v3302_v59  ;;  %v1721_v59 = vld [vmem:[%s4414_s6] sm:$0xf]  ;;  %s4160_s6 = smov [#allocation15]  }
 0x1f4   :  { %2556 = vmatpush.bf16.msra.mxu2 %v3494_v60  ;;  %v1726_v26 = vperm.slane %v1721_v59, 3  ;;  %s2588_s14 = sshll.u32 %s4160_s6, 4  ;;  %s2589_s14 = int_to_ptr.vmem [resolvable:$true] %s2588_s14 }
 0x1f5   :  { %2470 = vmatmul.bf16.vlgmr.msra.gmra.mxu3 %v4392_v28 }
 0x1f6   :  { %2518 = vmatpush.bf16.msrb.mxu3 %v3602_v0  ;;  %2548 = vmatmul.bf16.vlgmr.msra.gmra.mxu1 %v4378_v12  ;;  %v3430_v12 = vor.u32 %v3872_v17, %v3427_v18  ;;  %v1725_v17 = vperm.slane %v1721_v59, 2 }
 0x1f8   :  { %2557 = vmatpush.bf16.msra.mxu2 %v3478_v52 }
 0x1fa   :  { %2519 = vmatpush.bf16.msrb.mxu3 %v3586_v3  ;;  %v1724_v3 = vperm.slane %v1721_v59, 1 }
 0x1fc   :  { %2558 = vmatpush.bf16.msra.mxu2 %v3462_v5 }
 0x1fe   :  { %2520 = vmatpush.bf16.msrb.mxu3 %v3570_v13 }
 0x200   :  { %2559 = vmatpush.bf16.msra.mxu2 %v3446_v14 }
 0x202   :  { %2521 = vmatpush.bf16.msrb.mxu3 %v3554_v23 }
 0x204   :  { %2560 = vmatpush.bf16.msra.mxu2 %v3430_v12 }
 0x205   :  { %2522 = vmatmul.bf16.vlgmr.msrb.gmra.mxu3 %v4392_v28 }
 0x206   :  { %2566 = vmatpush.bf16.msra.mxu3 %v3670_v20 }
 0x207   :  { %2561 = vmatmul.bf16.vlgmr.msra.gmra.mxu2 %v4383_v4  ;;  %v3555_v4 = vld [vmem:[#allocation12 + $0x318] sm:$0xf0] }
 0x208   :  { %v3558_v48 = vor.u32 %v3904_v47, %v3555_v4 }
 0x20a   :  { %2567 = vmatpush.bf16.msra.mxu3 %v3654_v25 }
 0x20e   :  { %2568 = vmatpush.bf16.msra.mxu3 %v3638_v31 }
 0x212   :  { %2569 = vmatpush.bf16.msra.mxu3 %v3622_v35 }
 0x216   :  { %2570 = vmatpush.bf16.msra.mxu3 %v3606_v41 }
 0x21a   :  { %2571 = vmatpush.bf16.msra.mxu3 %v3590_v43 }
 0x21e   :  { %2572 = vmatpush.bf16.msra.mxu3 %v3574_v46 }
 0x222   :  { %2573 = vmatpush.bf16.msra.mxu3 %v3558_v48  ;;  %v2380_v49 = vpop.f32.mrf.mxu0 }
 0x225   :  { %2574 = vmatmul.bf16.vlgmr.msra.gmra.mxu3 %v4392_v28  ;;  %v1723_v28 = vperm.slane %v1721_v59, 0 }
 0x227   :  { %v2381_v62 = vadd.f32 %v2380_v49, %v1723_v28 }
 0x22a   :  { %v2382_v50 = vpop.f32.mrf.mxu0 }
 0x232   :  { %v2393_v51 = vpop.f32.mrf.mxu1  ;;  %v2432_v53 = vpop.f32.mrf.mxu0 }
 0x233   :  { %v2394_v0 = vadd.f32 %v2393_v51, %v2381_v62  ;;  %v2433_v6 = vadd.f32 %v2432_v53, %v1724_v3 }
 0x23a   :  { %v2395_v29 = vpop.f32.mrf.mxu1  ;;  %v2434_v54 = vpop.f32.mrf.mxu0 }
 0x242   :  { %v2445_v55 = vpop.f32.mrf.mxu1  ;;  %v2484_v40 = vpop.f32.mrf.mxu0 }
 0x243   :  { %v2446_v11 = vadd.f32 %v2445_v55, %v2433_v6  ;;  %v2485_v19 = vadd.f32 %v2484_v40, %v1725_v17 }
 0x249   :  { %v2406_v22 = vpop.f32.mrf.mxu2 }
 0x24a   :  { %v2447_v57 = vpop.f32.mrf.mxu1  ;;  %v2486_v58 = vpop.f32.mrf.mxu0  ;;  %v2407_v52 = vadd.f32 %v2406_v22, %v2394_v0 }
 0x251   :  { %v2408_v7 = vpop.f32.mrf.mxu2 }
 0x253   :  { %v2497_v8 = vpop.f32.mrf.mxu1 }
 0x254   :  { %v2498_v27 = vadd.f32 %v2497_v8, %v2485_v19 }
 0x25a   :  { %v2458_v60 = vpop.f32.mrf.mxu2 }
 0x25b   :  { %v2499_v34 = vpop.f32.mrf.mxu1  ;;  %v2459_v13 = vadd.f32 %v2458_v60, %v2446_v11 }
 0x262   :  { %v2536_v61 = vpop.f32.mrf.mxu0  ;;  %v2460_v63 = vpop.f32.mrf.mxu2 }
 0x263   :  { %v2537_v30 = vadd.f32 %v2536_v61, %v1726_v26 }
 0x268   :  { %v2419_v1 = vpop.f32.mrf.mxu3 }
 0x269   :  { %v2420_v38 = vadd.f32 %v2419_v1, %v2407_v52 }
 0x26a   :  { %v2538_v2 = vpop.f32.mrf.mxu0  ;;  %v2510_v39 = vpop.f32.mrf.mxu2 }
 0x26b   :  { %2579 = vst [vmem:[#allocation15] sm:$0xff] %v2420_v38  ;;  %v2511_v23 = vadd.f32 %v2510_v39, %v2498_v27 }
 0x270   :  { %v2421_v5 = vpop.f32.mrf.mxu3 }
 0x272   :  { %v2512_v10 = vpop.f32.mrf.mxu2 }
 0x273   :  { %v2549_v9 = vpop.f32.mrf.mxu1 }
 0x274   :  { %v2550_v31 = vadd.f32 %v2549_v9, %v2537_v30 }
 0x278   :  { %v2471_v14 = vpop.f32.mrf.mxu3 }
 0x279   :  { %v2472_v15 = vadd.f32 %v2471_v14, %v2459_v13 }
 0x27b   :  { %2580 = vst [vmem:[#allocation15 + $0x8] sm:$0xff] %v2472_v15  ;;  %v2551_v16 = vpop.f32.mrf.mxu1 }
 0x280   :  { %v2473_v18 = vpop.f32.mrf.mxu3 }
 0x288   :  { %v2523_v12 = vpop.f32.mrf.mxu3 }
 0x289   :  { %v2524_v20 = vadd.f32 %v2523_v12, %v2511_v23 }
 0x28a   :  { %v2562_v21 = vpop.f32.mrf.mxu2 }
 0x28b   :  { %2581 = vst [vmem:[#allocation15 + $0x10] sm:$0xff] %v2524_v20  ;;  %v2563_v32 = vadd.f32 %v2562_v21, %v2550_v31 }
 0x290   :  { %v2525_v24 = vpop.f32.mrf.mxu3 }
 0x292   :  { %v2564_v25 = vpop.f32.mrf.mxu2 }
 0x2a8   :  { %v2575_v33 = vpop.f32.mrf.mxu3 }
 0x2a9   :  { %v2576_v35 = vadd.f32 %v2575_v33, %v2563_v32 }
 0x2ab   :  { %2582 = vst [vmem:[#allocation15 + $0x18] sm:$0xff] %v2576_v35 }
 0x2ac   :  { %2593 = dma.vmem_to_hbm [thread:$0]  %s2589_s14, 512, %s2591_s1, [#allocation4]  }
 0x2b0   :  { %v2577_v36 = vpop.f32.mrf.mxu3 }
 0x2b1   :  { %4142 = dma.done.wait [#allocation4], 512  }
 0x2b2   :  { %4143 = vsyncadd [#allocation4], 4294966784 }
 0x2b3   :  { %2598 = vsyncpa [#allocation3], 1 }
 0x2b4   :  { %2599 = vsyncpa [#allocation7], 1 }
 0x2b5   :  { %2600 = vsyncpa [#allocation10], 1 }
 0x2b6   :  { %2601 = vsyncpa [#allocation13], 1 }
 0x2b7   :  { %2602 = vsyncpa [#allocation4], 1 }
 0x2b8   :  { %2603 = vsyncpa [#allocation5], 1 }

</bundles_post_ra>
